<compile_context>
chip_gen: v7x
topology: tpu7x:2x2x1
jax: 0.10.0
libtpu: 0.0.40
codegen_flags: <defaults>
</compile_context>

<pallas_src>
import functools

import jax
import jax.numpy as jnp
from jax import lax
from jax.experimental import pallas as pl
from jax.experimental.pallas import tpu as pltpu

KSIZE = 7
PAD = KSIZE // 2


def _round_up(x, m):
    return (x + m - 1) // m * m


def _ppeg_kernel(x_ref, w_ref, b_ref, o_ref, halo_ref, *, H, W, Wp, Bt):
    # x_ref : (Bt, 1+H*W, C)  tokens (cls + row-major flattened feature map)
    # w_ref : (7, 7, C)       fused depthwise weights (channel on lanes)
    # b_ref : (1, C)          fused bias
    # o_ref : (Bt, 1+H*W, C)  final output (cls row + conv result)
    # halo_ref : (H+2*PAD, Wp, C) persistent VMEM scratch with zero halo
    C = o_ref.shape[-1]
    HW = H * W
    halo_dtype = halo_ref.dtype

    # ---- per-grid-step setup (hoisted out of the per-image loop) -------------
    # Zero only the halo cells; the interior is overwritten for every image.
    # Done unconditionally each grid step (cheap, and safe under megacore grid
    # sharding -- a program_id()==0 guard might never run on the second core).
    zrow = jnp.zeros((PAD, Wp, C), halo_dtype)
    halo_ref[pl.ds(0, PAD), :, :] = zrow
    halo_ref[pl.ds(PAD + H, PAD), :, :] = zrow
    halo_ref[pl.ds(PAD, H), pl.ds(W, Wp - W), :] = jnp.zeros((H, Wp - W, C), halo_dtype)

    # Weights / bias: cast once and pre-slice the 49 (1,1,C) taps once (loop
    # invariant w.r.t. the fori_loop below, so the broadcasts are not
    # re-materialized inside the VALU-bound MAC loop).
    w = w_ref[...].astype(jnp.float32)                     # (7, 7, C)
    bias = b_ref[...].astype(jnp.float32)                  # (1, C)
    w_taps = [[w[kh, kw].reshape(1, 1, C) for kw in range(KSIZE)]
              for kh in range(KSIZE)]

    def body(bt, carry):
        # cls token passes straight through.
        o_ref[bt, pl.ds(0, 1), :] = x_ref[bt, pl.ds(0, 1), :]

        # Token -> NHWC relayout written directly into the interior of the
        # persistent halo scratch (single store; halo cells stay zero).
        feat = x_ref[bt, pl.ds(1, HW), :].reshape(H, W, C).astype(halo_dtype)
        halo_ref[pl.ds(PAD, H), pl.ds(0, W), :] = feat

        xp = halo_ref[...]                                  # (H+2*PAD, Wp, C)

        # 49-tap MAC loop: kw outer so only ONE rolled copy is live at a time.
        # Left/right halo columns come from the circular roll wrapping into the
        # right-hand zero columns (Wp >= W + PAD guarantees correctness).
        # Two accumulators break the serial add chain (ILP across VALU slots).
        acc0 = jnp.zeros((H, W, C), jnp.float32)
        acc1 = jnp.zeros((H, W, C), jnp.float32)
        for kw in range(KSIZE):
            s = (PAD - kw) % Wp
            rolled = xp if s == 0 else pltpu.roll(xp, shift=s, axis=1)  # XLU slot
            cols = rolled[:, :W, :].astype(jnp.float32)     # (H+2*PAD, W, C)
            for kh in range(KSIZE):
                tap = cols[kh:kh + H]                       # cheap third-minor slice
                term = tap * w_taps[kh][kw]
                if (kw + kh) % 2 == 0:
                    acc0 = acc0 + term
                else:
                    acc1 = acc1 + term

        y = (acc0 + acc1).reshape(HW, C) + bias             # (H*W, C)
        o_ref[bt, pl.ds(1, HW), :] = y.astype(o_ref.dtype)
        return carry

    lax.fori_loop(0, Bt, body, 0)


def _fuse_weights(C, w7, b7, w5, b5, w3, b3):
    # Fold 5x5 / 3x3 depthwise kernels + the identity ("+ cnn_feat") into one 7x7.
    wc = w7.astype(jnp.float32)
    wc = wc + jnp.pad(w5.astype(jnp.float32), ((0, 0), (1, 1), (1, 1)))
    wc = wc + jnp.pad(w3.astype(jnp.float32), ((0, 0), (2, 2), (2, 2)))
    wc = wc.at[:, PAD, PAD].add(1.0)
    wc = jnp.transpose(wc, (1, 2, 0))                       # (7, 7, C)
    bc = (b7 + b5 + b3).astype(jnp.float32).reshape(1, C)
    return wc, bc


def _vmem_limit_bytes():
    try:
        cap = int(pltpu.get_tpu_info().vmem_capacity_bytes)
    except Exception:
        cap = 64 << 20                      # conservative fallback (v7x physical VMEM)
    return int(min(cap * 3 // 4, 96 << 20))


def _pick_bt(B, N, Cp, H, W, Wp, io_itemsize, halo_itemsize, vmem_limit):
    # Pipelined I/O footprint per image: input + output block, double-buffered.
    io_per_image = 2 * 2 * N * Cp * io_itemsize
    # In-kernel intermediates are reused across the fori_loop over images, so
    # they do NOT scale with Bt: halo scratch + ~6 padded-map-sized f32 live
    # values (xp, rolled, cols, two accumulators, y/feat) + headroom.
    padded_map = (H + 2 * PAD) * Wp * Cp
    fixed = padded_map * halo_itemsize + 6 * padded_map * 4 + (1 << 20)
    budget = max(vmem_limit - fixed, io_per_image)
    bt = int(max(1, min(16, budget // max(io_per_image, 1))))
    # Keep >= 4 grid steps when possible (2 per v7x TensorCore so each core
    # still double-buffers its DMAs); >= 2 steps for tiny batches.
    if B >= 4:
        bt = min(bt, B // 4)
    elif B >= 2:
        bt = min(bt, B // 2)
    bt = max(1, min(bt, B))
    # TODO(synk): allow a ragged last block (pl.cdiv grid + masking) instead of
    # degrading Bt to 1 for prime batch sizes.
    while B % bt:
        bt -= 1
    return max(bt, 1)


@functools.partial(jax.jit, static_argnums=(1, 2))
def ppeg_forward(x, H, W, w7, b7, w5, b5, w3, b3):
    """x: (B, 1+H*W, C).  w7:(C,7,7) b7:(C,)  w5:(C,5,5) b5:(C,)  w3:(C,3,3) b3:(C,)."""
    B, N, C = x.shape
    assert N == 1 + H * W

    wc, bc = _fuse_weights(C, w7, b7, w5, b5, w3, b3)

    # Lane padding for ragged channel counts (no-op in the common C % 128 == 0 case).
    Cp = _round_up(C, 128)
    if Cp != C:
        x_in = jnp.pad(x, ((0, 0), (0, 0), (0, Cp - C)))
        wc = jnp.pad(wc, ((0, 0), (0, 0), (0, Cp - C)))
        bc = jnp.pad(bc, ((0, 0), (0, Cp - C)))
    else:
        x_in = x

    Wp = _round_up(W + PAD, 8)             # roll-trick needs Wp >= W + PAD, 8-aligned
    halo_dtype = jnp.bfloat16 if x.dtype == jnp.bfloat16 else jnp.float32
    vmem_limit = _vmem_limit_bytes()
    Bt = _pick_bt(B, N, Cp, H, W, Wp, x.dtype.itemsize,
                  jnp.dtype(halo_dtype).itemsize, vmem_limit)

    kernel = functools.partial(_ppeg_kernel, H=H, W=W, Wp=Wp, Bt=Bt)

    cost = pl.CostEstimate(
        flops=2 * KSIZE * KSIZE * B * H * W * C,
        transcendentals=0,
        bytes_accessed=2 * B * N * Cp * x.dtype.itemsize,
    )

    # TODO(synk): for very large per-image footprints (multi-MB N*Cp), tile within
    # the image along H (row bands with 2*PAD halo rows) instead of whole images.
    out = pl.pallas_call(
        kernel,
        out_shape=jax.ShapeDtypeStruct((B, N, Cp), x.dtype),
        grid_spec=pltpu.PrefetchScalarGridSpec(
            num_scalar_prefetch=0,
            grid=(B // Bt,),
            in_specs=[
                pl.BlockSpec((Bt, N, Cp), lambda b: (b, 0, 0)),
                pl.BlockSpec((KSIZE, KSIZE, Cp), lambda b: (0, 0, 0)),
                pl.BlockSpec((1, Cp), lambda b: (0, 0)),
            ],
            out_specs=pl.BlockSpec((Bt, N, Cp), lambda b: (b, 0, 0)),
            scratch_shapes=[pltpu.VMEM((H + 2 * PAD, Wp, Cp), halo_dtype)],
        ),
        compiler_params=pltpu.CompilerParams(
            dimension_semantics=("parallel",),
            vmem_limit_bytes=vmem_limit,
        ),
        cost_estimate=cost,
    )(x_in, wc, bc)

    if Cp != C:
        out = out[:, :, :C]
    return out


def _reference_forward(x, H, W, w7, b7, w5, b5, w3, b3):
    """Pure-JAX reference using lax depthwise convs (NCHW like PyTorch)."""
    B, N, C = x.shape
    cls_token = x[:, 0:1, :]
    cnn = jnp.transpose(x[:, 1:, :], (0, 2, 1)).reshape(B, C, H, W)

    def dwconv(inp, w, b, k):
        p = k // 2
        out = lax.conv_general_dilated(
            inp, w.reshape(C, 1, k, k),
            window_strides=(1, 1), padding=((p, p), (p, p)),
            dimension_numbers=("NCHW", "OIHW", "NCHW"),
            feature_group_count=C,
            precision=lax.Precision.HIGHEST)
        return out + b.reshape(1, C, 1, 1)

    y = dwconv(cnn, w7, b7, 7) + cnn + dwconv(cnn, w5, b5, 5) + dwconv(cnn, w3, b3, 3)
    y = jnp.transpose(y.reshape(B, C, H * W), (0, 2, 1))
    return jnp.concatenate([cls_token, y], axis=1)


if __name__ == "__main__":
    key = jax.random.PRNGKey(0)
    B, C, H, W = 2, 128, 8, 8
    N = 1 + H * W

    ks = jax.random.split(key, 7)
    x = jax.random.normal(ks[0], (B, N, C), dtype=jnp.float32)
    w7 = 0.05 * jax.random.normal(ks[1], (C, 7, 7), dtype=jnp.float32)
    b7 = 0.05 * jax.random.normal(ks[2], (C,), dtype=jnp.float32)
    w5 = 0.05 * jax.random.normal(ks[3], (C, 5, 5), dtype=jnp.float32)
    b5 = 0.05 * jax.random.normal(ks[4], (C,), dtype=jnp.float32)
    w3 = 0.05 * jax.random.normal(ks[5], (C, 3, 3), dtype=jnp.float32)
    b3 = 0.05 * jax.random.normal(ks[6], (C,), dtype=jnp.float32)

    out = ppeg_forward(x, H, W, w7, b7, w5, b5, w3, b3)
    out = jax.block_until_ready(out)

    ref = _reference_forward(x, H, W, w7, b7, w5, b5, w3, b3)
    assert out.shape == (B, N, C), out.shape
    assert jnp.allclose(out, ref, rtol=1e-4, atol=1e-4), "mismatch vs reference"

    print("KERNEL_OK")
</pallas_src>

<mosaic_0001>
module attributes {stable_mosaic.version = 11 : i64} {
  func.func @_ppeg_kernel(%arg0: i32, %arg1: memref<1x65x128xf32, #tpu.memory_space<vmem>>, %arg2: memref<7x7x128xf32, #tpu.memory_space<vmem>>, %arg3: memref<1x128xf32, #tpu.memory_space<vmem>>, %arg4: memref<1x65x128xf32, #tpu.memory_space<vmem>>, %arg5: memref<14x16x128xf32, #tpu.memory_space<vmem>>) attributes {dimension_semantics = [#tpu.dimension_semantics<parallel>], iteration_bounds = array<i64: 2>, scalar_prefetch = 0 : i64, scratch_operands = 1 : i64, tpu.core_type = #tpu.core_type<tc>, window_params = [{transform_indices = @transform_0, window_bounds = array<i64: 1, 65, 128>}, {pipeline_mode = #tpu.pipeline_mode<synchronous>, transform_indices = @transform_1, window_bounds = array<i64: 7, 7, 128>}, {pipeline_mode = #tpu.pipeline_mode<synchronous>, transform_indices = @transform_2, window_bounds = array<i64: 1, 128>}, {transform_indices = @transform_3, window_bounds = array<i64: 1, 65, 128>}]} {
    %cst = arith.constant 0.000000e+00 : f32
    %0 = vector.broadcast %cst : f32 to vector<3x16x128xf32>
    %c0 = arith.constant 0 : index
    %c0_0 = arith.constant 0 : index
    %c0_1 = arith.constant 0 : index
    %1 = vector.load %arg5[%c0, %c0_0, %c0_1] : memref<14x16x128xf32, #tpu.memory_space<vmem>>, vector<3x16x128xf32>
    tpu.vector_store %arg5[%c0, %c0_0, %c0_1], %0 {strides = array<i32>} : memref<14x16x128xf32, #tpu.memory_space<vmem>>, vector<3x16x128xf32>,
    %c11 = arith.constant 11 : index
    %c0_2 = arith.constant 0 : index
    %c0_3 = arith.constant 0 : index
    %2 = vector.load %arg5[%c11, %c0_2, %c0_3] : memref<14x16x128xf32, #tpu.memory_space<vmem>>, vector<3x16x128xf32>
    tpu.vector_store %arg5[%c11, %c0_2, %c0_3], %0 {strides = array<i32>} : memref<14x16x128xf32, #tpu.memory_space<vmem>>, vector<3x16x128xf32>,
    %cst_4 = arith.constant 0.000000e+00 : f32
    %3 = vector.broadcast %cst_4 : f32 to vector<8x8x128xf32>
    %c3 = arith.constant 3 : index
    %c8 = arith.constant 8 : index
    %c0_5 = arith.constant 0 : index
    %4 = vector.load %arg5[%c3, %c8, %c0_5] : memref<14x16x128xf32, #tpu.memory_space<vmem>>, vector<8x8x128xf32>
    tpu.vector_store %arg5[%c3, %c8, %c0_5], %3 {strides = array<i32>} : memref<14x16x128xf32, #tpu.memory_space<vmem>>, vector<8x8x128xf32>,
    %c0_6 = arith.constant 0 : index
    %c0_7 = arith.constant 0 : index
    %c0_8 = arith.constant 0 : index
    %5 = vector.load %arg2[%c0_6, %c0_7, %c0_8] : memref<7x7x128xf32, #tpu.memory_space<vmem>>, vector<7x7x128xf32>
    %c0_9 = arith.constant 0 : index
    %c0_10 = arith.constant 0 : index
    %6 = vector.load %arg3[%c0_9, %c0_10] : memref<1x128xf32, #tpu.memory_space<vmem>>, vector<1x128xf32>
    %7 = vector.extract_strided_slice %5 {offsets = [0, 0, 0], sizes = [1, 1, 128], strides = [1, 1, 1]} : vector<7x7x128xf32> to vector<1x1x128xf32>
    %8 = vector.shape_cast %7 : vector<1x1x128xf32> to vector<128xf32>
    %9 = vector.shape_cast %8 : vector<128xf32> to vector<1x1x128xf32>
    %10 = vector.extract_strided_slice %5 {offsets = [0, 1, 0], sizes = [1, 1, 128], strides = [1, 1, 1]} : vector<7x7x128xf32> to vector<1x1x128xf32>
    %11 = vector.shape_cast %10 : vector<1x1x128xf32> to vector<128xf32>
    %12 = vector.shape_cast %11 : vector<128xf32> to vector<1x1x128xf32>
    %13 = vector.extract_strided_slice %5 {offsets = [0, 2, 0], sizes = [1, 1, 128], strides = [1, 1, 1]} : vector<7x7x128xf32> to vector<1x1x128xf32>
    %14 = vector.shape_cast %13 : vector<1x1x128xf32> to vector<128xf32>
    %15 = vector.shape_cast %14 : vector<128xf32> to vector<1x1x128xf32>
    %16 = vector.extract_strided_slice %5 {offsets = [0, 3, 0], sizes = [1, 1, 128], strides = [1, 1, 1]} : vector<7x7x128xf32> to vector<1x1x128xf32>
    %17 = vector.shape_cast %16 : vector<1x1x128xf32> to vector<128xf32>
    %18 = vector.shape_cast %17 : vector<128xf32> to vector<1x1x128xf32>
    %19 = vector.extract_strided_slice %5 {offsets = [0, 4, 0], sizes = [1, 1, 128], strides = [1, 1, 1]} : vector<7x7x128xf32> to vector<1x1x128xf32>
    %20 = vector.shape_cast %19 : vector<1x1x128xf32> to vector<128xf32>
    %21 = vector.shape_cast %20 : vector<128xf32> to vector<1x1x128xf32>
    %22 = vector.extract_strided_slice %5 {offsets = [0, 5, 0], sizes = [1, 1, 128], strides = [1, 1, 1]} : vector<7x7x128xf32> to vector<1x1x128xf32>
    %23 = vector.shape_cast %22 : vector<1x1x128xf32> to vector<128xf32>
    %24 = vector.shape_cast %23 : vector<128xf32> to vector<1x1x128xf32>
    %25 = vector.extract_strided_slice %5 {offsets = [0, 6, 0], sizes = [1, 1, 128], strides = [1, 1, 1]} : vector<7x7x128xf32> to vector<1x1x128xf32>
    %26 = vector.shape_cast %25 : vector<1x1x128xf32> to vector<128xf32>
    %27 = vector.shape_cast %26 : vector<128xf32> to vector<1x1x128xf32>
    %28 = vector.extract_strided_slice %5 {offsets = [1, 0, 0], sizes = [1, 1, 128], strides = [1, 1, 1]} : vector<7x7x128xf32> to vector<1x1x128xf32>
    %29 = vector.shape_cast %28 : vector<1x1x128xf32> to vector<128xf32>
    %30 = vector.shape_cast %29 : vector<128xf32> to vector<1x1x128xf32>
    %31 = vector.extract_strided_slice %5 {offsets = [1, 1, 0], sizes = [1, 1, 128], strides = [1, 1, 1]} : vector<7x7x128xf32> to vector<1x1x128xf32>
    %32 = vector.shape_cast %31 : vector<1x1x128xf32> to vector<128xf32>
    %33 = vector.shape_cast %32 : vector<128xf32> to vector<1x1x128xf32>
    %34 = vector.extract_strided_slice %5 {offsets = [1, 2, 0], sizes = [1, 1, 128], strides = [1, 1, 1]} : vector<7x7x128xf32> to vector<1x1x128xf32>
    %35 = vector.shape_cast %34 : vector<1x1x128xf32> to vector<128xf32>
    %36 = vector.shape_cast %35 : vector<128xf32> to vector<1x1x128xf32>
    %37 = vector.extract_strided_slice %5 {offsets = [1, 3, 0], sizes = [1, 1, 128], strides = [1, 1, 1]} : vector<7x7x128xf32> to vector<1x1x128xf32>
    %38 = vector.shape_cast %37 : vector<1x1x128xf32> to vector<128xf32>
    %39 = vector.shape_cast %38 : vector<128xf32> to vector<1x1x128xf32>
    %40 = vector.extract_strided_slice %5 {offsets = [1, 4, 0], sizes = [1, 1, 128], strides = [1, 1, 1]} : vector<7x7x128xf32> to vector<1x1x128xf32>
    %41 = vector.shape_cast %40 : vector<1x1x128xf32> to vector<128xf32>
    %42 = vector.shape_cast %41 : vector<128xf32> to vector<1x1x128xf32>
    %43 = vector.extract_strided_slice %5 {offsets = [1, 5, 0], sizes = [1, 1, 128], strides = [1, 1, 1]} : vector<7x7x128xf32> to vector<1x1x128xf32>
    %44 = vector.shape_cast %43 : vector<1x1x128xf32> to vector<128xf32>
    %45 = vector.shape_cast %44 : vector<128xf32> to vector<1x1x128xf32>
    %46 = vector.extract_strided_slice %5 {offsets = [1, 6, 0], sizes = [1, 1, 128], strides = [1, 1, 1]} : vector<7x7x128xf32> to vector<1x1x128xf32>
    %47 = vector.shape_cast %46 : vector<1x1x128xf32> to vector<128xf32>
    %48 = vector.shape_cast %47 : vector<128xf32> to vector<1x1x128xf32>
    %49 = vector.extract_strided_slice %5 {offsets = [2, 0, 0], sizes = [1, 1, 128], strides = [1, 1, 1]} : vector<7x7x128xf32> to vector<1x1x128xf32>
    %50 = vector.shape_cast %49 : vector<1x1x128xf32> to vector<128xf32>
    %51 = vector.shape_cast %50 : vector<128xf32> to vector<1x1x128xf32>
    %52 = vector.extract_strided_slice %5 {offsets = [2, 1, 0], sizes = [1, 1, 128], strides = [1, 1, 1]} : vector<7x7x128xf32> to vector<1x1x128xf32>
    %53 = vector.shape_cast %52 : vector<1x1x128xf32> to vector<128xf32>
    %54 = vector.shape_cast %53 : vector<128xf32> to vector<1x1x128xf32>
    %55 = vector.extract_strided_slice %5 {offsets = [2, 2, 0], sizes = [1, 1, 128], strides = [1, 1, 1]} : vector<7x7x128xf32> to vector<1x1x128xf32>
    %56 = vector.shape_cast %55 : vector<1x1x128xf32> to vector<128xf32>
    %57 = vector.shape_cast %56 : vector<128xf32> to vector<1x1x128xf32>
    %58 = vector.extract_strided_slice %5 {offsets = [2, 3, 0], sizes = [1, 1, 128], strides = [1, 1, 1]} : vector<7x7x128xf32> to vector<1x1x128xf32>
    %59 = vector.shape_cast %58 : vector<1x1x128xf32> to vector<128xf32>
    %60 = vector.shape_cast %59 : vector<128xf32> to vector<1x1x128xf32>
    %61 = vector.extract_strided_slice %5 {offsets = [2, 4, 0], sizes = [1, 1, 128], strides = [1, 1, 1]} : vector<7x7x128xf32> to vector<1x1x128xf32>
    %62 = vector.shape_cast %61 : vector<1x1x128xf32> to vector<128xf32>
    %63 = vector.shape_cast %62 : vector<128xf32> to vector<1x1x128xf32>
    %64 = vector.extract_strided_slice %5 {offsets = [2, 5, 0], sizes = [1, 1, 128], strides = [1, 1, 1]} : vector<7x7x128xf32> to vector<1x1x128xf32>
    %65 = vector.shape_cast %64 : vector<1x1x128xf32> to vector<128xf32>
    %66 = vector.shape_cast %65 : vector<128xf32> to vector<1x1x128xf32>
    %67 = vector.extract_strided_slice %5 {offsets = [2, 6, 0], sizes = [1, 1, 128], strides = [1, 1, 1]} : vector<7x7x128xf32> to vector<1x1x128xf32>
    %68 = vector.shape_cast %67 : vector<1x1x128xf32> to vector<128xf32>
    %69 = vector.shape_cast %68 : vector<128xf32> to vector<1x1x128xf32>
    %70 = vector.extract_strided_slice %5 {offsets = [3, 0, 0], sizes = [1, 1, 128], strides = [1, 1, 1]} : vector<7x7x128xf32> to vector<1x1x128xf32>
    %71 = vector.shape_cast %70 : vector<1x1x128xf32> to vector<128xf32>
    %72 = vector.shape_cast %71 : vector<128xf32> to vector<1x1x128xf32>
    %73 = vector.extract_strided_slice %5 {offsets = [3, 1, 0], sizes = [1, 1, 128], strides = [1, 1, 1]} : vector<7x7x128xf32> to vector<1x1x128xf32>
    %74 = vector.shape_cast %73 : vector<1x1x128xf32> to vector<128xf32>
    %75 = vector.shape_cast %74 : vector<128xf32> to vector<1x1x128xf32>
    %76 = vector.extract_strided_slice %5 {offsets = [3, 2, 0], sizes = [1, 1, 128], strides = [1, 1, 1]} : vector<7x7x128xf32> to vector<1x1x128xf32>
    %77 = vector.shape_cast %76 : vector<1x1x128xf32> to vector<128xf32>
    %78 = vector.shape_cast %77 : vector<128xf32> to vector<1x1x128xf32>
    %79 = vector.extract_strided_slice %5 {offsets = [3, 3, 0], sizes = [1, 1, 128], strides = [1, 1, 1]} : vector<7x7x128xf32> to vector<1x1x128xf32>
    %80 = vector.shape_cast %79 : vector<1x1x128xf32> to vector<128xf32>
    %81 = vector.shape_cast %80 : vector<128xf32> to vector<1x1x128xf32>
    %82 = vector.extract_strided_slice %5 {offsets = [3, 4, 0], sizes = [1, 1, 128], strides = [1, 1, 1]} : vector<7x7x128xf32> to vector<1x1x128xf32>
    %83 = vector.shape_cast %82 : vector<1x1x128xf32> to vector<128xf32>
    %84 = vector.shape_cast %83 : vector<128xf32> to vector<1x1x128xf32>
    %85 = vector.extract_strided_slice %5 {offsets = [3, 5, 0], sizes = [1, 1, 128], strides = [1, 1, 1]} : vector<7x7x128xf32> to vector<1x1x128xf32>
    %86 = vector.shape_cast %85 : vector<1x1x128xf32> to vector<128xf32>
    %87 = vector.shape_cast %86 : vector<128xf32> to vector<1x1x128xf32>
    %88 = vector.extract_strided_slice %5 {offsets = [3, 6, 0], sizes = [1, 1, 128], strides = [1, 1, 1]} : vector<7x7x128xf32> to vector<1x1x128xf32>
    %89 = vector.shape_cast %88 : vector<1x1x128xf32> to vector<128xf32>
    %90 = vector.shape_cast %89 : vector<128xf32> to vector<1x1x128xf32>
    %91 = vector.extract_strided_slice %5 {offsets = [4, 0, 0], sizes = [1, 1, 128], strides = [1, 1, 1]} : vector<7x7x128xf32> to vector<1x1x128xf32>
    %92 = vector.shape_cast %91 : vector<1x1x128xf32> to vector<128xf32>
    %93 = vector.shape_cast %92 : vector<128xf32> to vector<1x1x128xf32>
    %94 = vector.extract_strided_slice %5 {offsets = [4, 1, 0], sizes = [1, 1, 128], strides = [1, 1, 1]} : vector<7x7x128xf32> to vector<1x1x128xf32>
    %95 = vector.shape_cast %94 : vector<1x1x128xf32> to vector<128xf32>
    %96 = vector.shape_cast %95 : vector<128xf32> to vector<1x1x128xf32>
    %97 = vector.extract_strided_slice %5 {offsets = [4, 2, 0], sizes = [1, 1, 128], strides = [1, 1, 1]} : vector<7x7x128xf32> to vector<1x1x128xf32>
    %98 = vector.shape_cast %97 : vector<1x1x128xf32> to vector<128xf32>
    %99 = vector.shape_cast %98 : vector<128xf32> to vector<1x1x128xf32>
    %100 = vector.extract_strided_slice %5 {offsets = [4, 3, 0], sizes = [1, 1, 128], strides = [1, 1, 1]} : vector<7x7x128xf32> to vector<1x1x128xf32>
    %101 = vector.shape_cast %100 : vector<1x1x128xf32> to vector<128xf32>
    %102 = vector.shape_cast %101 : vector<128xf32> to vector<1x1x128xf32>
    %103 = vector.extract_strided_slice %5 {offsets = [4, 4, 0], sizes = [1, 1, 128], strides = [1, 1, 1]} : vector<7x7x128xf32> to vector<1x1x128xf32>
    %104 = vector.shape_cast %103 : vector<1x1x128xf32> to vector<128xf32>
    %105 = vector.shape_cast %104 : vector<128xf32> to vector<1x1x128xf32>
    %106 = vector.extract_strided_slice %5 {offsets = [4, 5, 0], sizes = [1, 1, 128], strides = [1, 1, 1]} : vector<7x7x128xf32> to vector<1x1x128xf32>
    %107 = vector.shape_cast %106 : vector<1x1x128xf32> to vector<128xf32>
    %108 = vector.shape_cast %107 : vector<128xf32> to vector<1x1x128xf32>
    %109 = vector.extract_strided_slice %5 {offsets = [4, 6, 0], sizes = [1, 1, 128], strides = [1, 1, 1]} : vector<7x7x128xf32> to vector<1x1x128xf32>
    %110 = vector.shape_cast %109 : vector<1x1x128xf32> to vector<128xf32>
    %111 = vector.shape_cast %110 : vector<128xf32> to vector<1x1x128xf32>
    %112 = vector.extract_strided_slice %5 {offsets = [5, 0, 0], sizes = [1, 1, 128], strides = [1, 1, 1]} : vector<7x7x128xf32> to vector<1x1x128xf32>
    %113 = vector.shape_cast %112 : vector<1x1x128xf32> to vector<128xf32>
    %114 = vector.shape_cast %113 : vector<128xf32> to vector<1x1x128xf32>
    %115 = vector.extract_strided_slice %5 {offsets = [5, 1, 0], sizes = [1, 1, 128], strides = [1, 1, 1]} : vector<7x7x128xf32> to vector<1x1x128xf32>
    %116 = vector.shape_cast %115 : vector<1x1x128xf32> to vector<128xf32>
    %117 = vector.shape_cast %116 : vector<128xf32> to vector<1x1x128xf32>
    %118 = vector.extract_strided_slice %5 {offsets = [5, 2, 0], sizes = [1, 1, 128], strides = [1, 1, 1]} : vector<7x7x128xf32> to vector<1x1x128xf32>
    %119 = vector.shape_cast %118 : vector<1x1x128xf32> to vector<128xf32>
    %120 = vector.shape_cast %119 : vector<128xf32> to vector<1x1x128xf32>
    %121 = vector.extract_strided_slice %5 {offsets = [5, 3, 0], sizes = [1, 1, 128], strides = [1, 1, 1]} : vector<7x7x128xf32> to vector<1x1x128xf32>
    %122 = vector.shape_cast %121 : vector<1x1x128xf32> to vector<128xf32>
    %123 = vector.shape_cast %122 : vector<128xf32> to vector<1x1x128xf32>
    %124 = vector.extract_strided_slice %5 {offsets = [5, 4, 0], sizes = [1, 1, 128], strides = [1, 1, 1]} : vector<7x7x128xf32> to vector<1x1x128xf32>
    %125 = vector.shape_cast %124 : vector<1x1x128xf32> to vector<128xf32>
    %126 = vector.shape_cast %125 : vector<128xf32> to vector<1x1x128xf32>
    %127 = vector.extract_strided_slice %5 {offsets = [5, 5, 0], sizes = [1, 1, 128], strides = [1, 1, 1]} : vector<7x7x128xf32> to vector<1x1x128xf32>
    %128 = vector.shape_cast %127 : vector<1x1x128xf32> to vector<128xf32>
    %129 = vector.shape_cast %128 : vector<128xf32> to vector<1x1x128xf32>
    %130 = vector.extract_strided_slice %5 {offsets = [5, 6, 0], sizes = [1, 1, 128], strides = [1, 1, 1]} : vector<7x7x128xf32> to vector<1x1x128xf32>
    %131 = vector.shape_cast %130 : vector<1x1x128xf32> to vector<128xf32>
    %132 = vector.shape_cast %131 : vector<128xf32> to vector<1x1x128xf32>
    %133 = vector.extract_strided_slice %5 {offsets = [6, 0, 0], sizes = [1, 1, 128], strides = [1, 1, 1]} : vector<7x7x128xf32> to vector<1x1x128xf32>
    %134 = vector.shape_cast %133 : vector<1x1x128xf32> to vector<128xf32>
    %135 = vector.shape_cast %134 : vector<128xf32> to vector<1x1x128xf32>
    %136 = vector.extract_strided_slice %5 {offsets = [6, 1, 0], sizes = [1, 1, 128], strides = [1, 1, 1]} : vector<7x7x128xf32> to vector<1x1x128xf32>
    %137 = vector.shape_cast %136 : vector<1x1x128xf32> to vector<128xf32>
    %138 = vector.shape_cast %137 : vector<128xf32> to vector<1x1x128xf32>
    %139 = vector.extract_strided_slice %5 {offsets = [6, 2, 0], sizes = [1, 1, 128], strides = [1, 1, 1]} : vector<7x7x128xf32> to vector<1x1x128xf32>
    %140 = vector.shape_cast %139 : vector<1x1x128xf32> to vector<128xf32>
    %141 = vector.shape_cast %140 : vector<128xf32> to vector<1x1x128xf32>
    %142 = vector.extract_strided_slice %5 {offsets = [6, 3, 0], sizes = [1, 1, 128], strides = [1, 1, 1]} : vector<7x7x128xf32> to vector<1x1x128xf32>
    %143 = vector.shape_cast %142 : vector<1x1x128xf32> to vector<128xf32>
    %144 = vector.shape_cast %143 : vector<128xf32> to vector<1x1x128xf32>
    %145 = vector.extract_strided_slice %5 {offsets = [6, 4, 0], sizes = [1, 1, 128], strides = [1, 1, 1]} : vector<7x7x128xf32> to vector<1x1x128xf32>
    %146 = vector.shape_cast %145 : vector<1x1x128xf32> to vector<128xf32>
    %147 = vector.shape_cast %146 : vector<128xf32> to vector<1x1x128xf32>
    %148 = vector.extract_strided_slice %5 {offsets = [6, 5, 0], sizes = [1, 1, 128], strides = [1, 1, 1]} : vector<7x7x128xf32> to vector<1x1x128xf32>
    %149 = vector.shape_cast %148 : vector<1x1x128xf32> to vector<128xf32>
    %150 = vector.shape_cast %149 : vector<128xf32> to vector<1x1x128xf32>
    %151 = vector.extract_strided_slice %5 {offsets = [6, 6, 0], sizes = [1, 1, 128], strides = [1, 1, 1]} : vector<7x7x128xf32> to vector<1x1x128xf32>
    %152 = vector.shape_cast %151 : vector<1x1x128xf32> to vector<128xf32>
    %153 = vector.shape_cast %152 : vector<128xf32> to vector<1x1x128xf32>
    %c0_i32 = arith.constant 0 : i32
    %154 = arith.index_cast %c0_i32 : i32 to index
    %c0_11 = arith.constant 0 : index
    %c0_12 = arith.constant 0 : index
    %155 = vector.load %arg1[%154, %c0_11, %c0_12] : memref<1x65x128xf32, #tpu.memory_space<vmem>>, vector<1x1x128xf32>
    %156 = vector.shape_cast %155 : vector<1x1x128xf32> to vector<1x128xf32>
    %157 = arith.index_cast %c0_i32 : i32 to index
    %c0_13 = arith.constant 0 : index
    %c0_14 = arith.constant 0 : index
    %158 = vector.load %arg4[%157, %c0_13, %c0_14] : memref<1x65x128xf32, #tpu.memory_space<vmem>>, vector<1x1x128xf32>
    %159 = vector.shape_cast %158 : vector<1x1x128xf32> to vector<1x128xf32>
    %160 = vector.shape_cast %156 : vector<1x128xf32> to vector<1x1x128xf32>
    tpu.vector_store %arg4[%157, %c0_13, %c0_14], %160 {strides = array<i32>} : memref<1x65x128xf32, #tpu.memory_space<vmem>>, vector<1x1x128xf32>,
    %161 = arith.index_cast %c0_i32 : i32 to index
    %c1 = arith.constant 1 : index
    %c0_15 = arith.constant 0 : index
    %162 = vector.load %arg1[%161, %c1, %c0_15] : memref<1x65x128xf32, #tpu.memory_space<vmem>>, vector<1x64x128xf32>
    %163 = vector.shape_cast %162 : vector<1x64x128xf32> to vector<64x128xf32>
    %164 = vector.shape_cast %163 : vector<64x128xf32> to vector<8x8x128xf32>
    %c3_16 = arith.constant 3 : index
    %c0_17 = arith.constant 0 : index
    %c0_18 = arith.constant 0 : index
    %165 = vector.load %arg5[%c3_16, %c0_17, %c0_18] : memref<14x16x128xf32, #tpu.memory_space<vmem>>, vector<8x8x128xf32>
    tpu.vector_store %arg5[%c3_16, %c0_17, %c0_18], %164 {strides = array<i32>} : memref<14x16x128xf32, #tpu.memory_space<vmem>>, vector<8x8x128xf32>,
    %c0_19 = arith.constant 0 : index
    %c0_20 = arith.constant 0 : index
    %c0_21 = arith.constant 0 : index
    %166 = vector.load %arg5[%c0_19, %c0_20, %c0_21] : memref<14x16x128xf32, #tpu.memory_space<vmem>>, vector<14x16x128xf32>
    %cst_22 = arith.constant 0.000000e+00 : f32
    %167 = vector.broadcast %cst_22 : f32 to vector<8x8x128xf32>
    %cst_23 = arith.constant 0.000000e+00 : f32
    %168 = vector.broadcast %cst_23 : f32 to vector<8x8x128xf32>
    %c3_i32 = arith.constant 3 : i32
    %169 = tpu.dynamic_rotate %166 by %c3_i32 dim 1 : vector<14x16x128xf32>, i32 -> vector<14x16x128xf32>
    %170 = vector.extract_strided_slice %169 {offsets = [0, 0, 0], sizes = [14, 8, 128], strides = [1, 1, 1]} : vector<14x16x128xf32> to vector<14x8x128xf32>
    %171 = vector.extract_strided_slice %170 {offsets = [0, 0, 0], sizes = [8, 8, 128], strides = [1, 1, 1]} : vector<14x8x128xf32> to vector<8x8x128xf32>
    %172 = vector.broadcast %9 : vector<1x1x128xf32> to vector<8x8x128xf32>
    %173 = arith.mulf %171, %172 : vector<8x8x128xf32>
    %174 = arith.addf %167, %173 : vector<8x8x128xf32>
    %175 = vector.extract_strided_slice %170 {offsets = [1, 0, 0], sizes = [8, 8, 128], strides = [1, 1, 1]} : vector<14x8x128xf32> to vector<8x8x128xf32>
    %176 = vector.broadcast %30 : vector<1x1x128xf32> to vector<8x8x128xf32>
    %177 = arith.mulf %175, %176 : vector<8x8x128xf32>
    %178 = arith.addf %168, %177 : vector<8x8x128xf32>
    %179 = vector.extract_strided_slice %170 {offsets = [2, 0, 0], sizes = [8, 8, 128], strides = [1, 1, 1]} : vector<14x8x128xf32> to vector<8x8x128xf32>
    %180 = vector.broadcast %51 : vector<1x1x128xf32> to vector<8x8x128xf32>
    %181 = arith.mulf %179, %180 : vector<8x8x128xf32>
    %182 = arith.addf %174, %181 : vector<8x8x128xf32>
    %183 = vector.extract_strided_slice %170 {offsets = [3, 0, 0], sizes = [8, 8, 128], strides = [1, 1, 1]} : vector<14x8x128xf32> to vector<8x8x128xf32>
    %184 = vector.broadcast %72 : vector<1x1x128xf32> to vector<8x8x128xf32>
    %185 = arith.mulf %183, %184 : vector<8x8x128xf32>
    %186 = arith.addf %178, %185 : vector<8x8x128xf32>
    %187 = vector.extract_strided_slice %170 {offsets = [4, 0, 0], sizes = [8, 8, 128], strides = [1, 1, 1]} : vector<14x8x128xf32> to vector<8x8x128xf32>
    %188 = vector.broadcast %93 : vector<1x1x128xf32> to vector<8x8x128xf32>
    %189 = arith.mulf %187, %188 : vector<8x8x128xf32>
    %190 = arith.addf %182, %189 : vector<8x8x128xf32>
    %191 = vector.extract_strided_slice %170 {offsets = [5, 0, 0], sizes = [8, 8, 128], strides = [1, 1, 1]} : vector<14x8x128xf32> to vector<8x8x128xf32>
    %192 = vector.broadcast %114 : vector<1x1x128xf32> to vector<8x8x128xf32>
    %193 = arith.mulf %191, %192 : vector<8x8x128xf32>
    %194 = arith.addf %186, %193 : vector<8x8x128xf32>
    %195 = vector.extract_strided_slice %170 {offsets = [6, 0, 0], sizes = [8, 8, 128], strides = [1, 1, 1]} : vector<14x8x128xf32> to vector<8x8x128xf32>
    %196 = vector.broadcast %135 : vector<1x1x128xf32> to vector<8x8x128xf32>
    %197 = arith.mulf %195, %196 : vector<8x8x128xf32>
    %198 = arith.addf %190, %197 : vector<8x8x128xf32>
    %c2_i32 = arith.constant 2 : i32
    %199 = tpu.dynamic_rotate %166 by %c2_i32 dim 1 : vector<14x16x128xf32>, i32 -> vector<14x16x128xf32>
    %200 = vector.extract_strided_slice %199 {offsets = [0, 0, 0], sizes = [14, 8, 128], strides = [1, 1, 1]} : vector<14x16x128xf32> to vector<14x8x128xf32>
    %201 = vector.extract_strided_slice %200 {offsets = [0, 0, 0], sizes = [8, 8, 128], strides = [1, 1, 1]} : vector<14x8x128xf32> to vector<8x8x128xf32>
    %202 = vector.broadcast %12 : vector<1x1x128xf32> to vector<8x8x128xf32>
    %203 = arith.mulf %201, %202 : vector<8x8x128xf32>
    %204 = arith.addf %194, %203 : vector<8x8x128xf32>
    %205 = vector.extract_strided_slice %200 {offsets = [1, 0, 0], sizes = [8, 8, 128], strides = [1, 1, 1]} : vector<14x8x128xf32> to vector<8x8x128xf32>
    %206 = vector.broadcast %33 : vector<1x1x128xf32> to vector<8x8x128xf32>
    %207 = arith.mulf %205, %206 : vector<8x8x128xf32>
    %208 = arith.addf %198, %207 : vector<8x8x128xf32>
    %209 = vector.extract_strided_slice %200 {offsets = [2, 0, 0], sizes = [8, 8, 128], strides = [1, 1, 1]} : vector<14x8x128xf32> to vector<8x8x128xf32>
    %210 = vector.broadcast %54 : vector<1x1x128xf32> to vector<8x8x128xf32>
    %211 = arith.mulf %209, %210 : vector<8x8x128xf32>
    %212 = arith.addf %204, %211 : vector<8x8x128xf32>
    %213 = vector.extract_strided_slice %200 {offsets = [3, 0, 0], sizes = [8, 8, 128], strides = [1, 1, 1]} : vector<14x8x128xf32> to vector<8x8x128xf32>
    %214 = vector.broadcast %75 : vector<1x1x128xf32> to vector<8x8x128xf32>
    %215 = arith.mulf %213, %214 : vector<8x8x128xf32>
    %216 = arith.addf %208, %215 : vector<8x8x128xf32>
    %217 = vector.extract_strided_slice %200 {offsets = [4, 0, 0], sizes = [8, 8, 128], strides = [1, 1, 1]} : vector<14x8x128xf32> to vector<8x8x128xf32>
    %218 = vector.broadcast %96 : vector<1x1x128xf32> to vector<8x8x128xf32>
    %219 = arith.mulf %217, %218 : vector<8x8x128xf32>
    %220 = arith.addf %212, %219 : vector<8x8x128xf32>
    %221 = vector.extract_strided_slice %200 {offsets = [5, 0, 0], sizes = [8, 8, 128], strides = [1, 1, 1]} : vector<14x8x128xf32> to vector<8x8x128xf32>
    %222 = vector.broadcast %117 : vector<1x1x128xf32> to vector<8x8x128xf32>
    %223 = arith.mulf %221, %222 : vector<8x8x128xf32>
    %224 = arith.addf %216, %223 : vector<8x8x128xf32>
    %225 = vector.extract_strided_slice %200 {offsets = [6, 0, 0], sizes = [8, 8, 128], strides = [1, 1, 1]} : vector<14x8x128xf32> to vector<8x8x128xf32>
    %226 = vector.broadcast %138 : vector<1x1x128xf32> to vector<8x8x128xf32>
    %227 = arith.mulf %225, %226 : vector<8x8x128xf32>
    %228 = arith.addf %220, %227 : vector<8x8x128xf32>
    %c1_i32 = arith.constant 1 : i32
    %229 = tpu.dynamic_rotate %166 by %c1_i32 dim 1 : vector<14x16x128xf32>, i32 -> vector<14x16x128xf32>
    %230 = vector.extract_strided_slice %229 {offsets = [0, 0, 0], sizes = [14, 8, 128], strides = [1, 1, 1]} : vector<14x16x128xf32> to vector<14x8x128xf32>
    %231 = vector.extract_strided_slice %230 {offsets = [0, 0, 0], sizes = [8, 8, 128], strides = [1, 1, 1]} : vector<14x8x128xf32> to vector<8x8x128xf32>
    %232 = vector.broadcast %15 : vector<1x1x128xf32> to vector<8x8x128xf32>
    %233 = arith.mulf %231, %232 : vector<8x8x128xf32>
    %234 = arith.addf %224, %233 : vector<8x8x128xf32>
    %235 = vector.extract_strided_slice %230 {offsets = [1, 0, 0], sizes = [8, 8, 128], strides = [1, 1, 1]} : vector<14x8x128xf32> to vector<8x8x128xf32>
    %236 = vector.broadcast %36 : vector<1x1x128xf32> to vector<8x8x128xf32>
    %237 = arith.mulf %235, %236 : vector<8x8x128xf32>
    %238 = arith.addf %228, %237 : vector<8x8x128xf32>
    %239 = vector.extract_strided_slice %230 {offsets = [2, 0, 0], sizes = [8, 8, 128], strides = [1, 1, 1]} : vector<14x8x128xf32> to vector<8x8x128xf32>
    %240 = vector.broadcast %57 : vector<1x1x128xf32> to vector<8x8x128xf32>
    %241 = arith.mulf %239, %240 : vector<8x8x128xf32>
    %242 = arith.addf %234, %241 : vector<8x8x128xf32>
    %243 = vector.extract_strided_slice %230 {offsets = [3, 0, 0], sizes = [8, 8, 128], strides = [1, 1, 1]} : vector<14x8x128xf32> to vector<8x8x128xf32>
    %244 = vector.broadcast %78 : vector<1x1x128xf32> to vector<8x8x128xf32>
    %245 = arith.mulf %243, %244 : vector<8x8x128xf32>
    %246 = arith.addf %238, %245 : vector<8x8x128xf32>
    %247 = vector.extract_strided_slice %230 {offsets = [4, 0, 0], sizes = [8, 8, 128], strides = [1, 1, 1]} : vector<14x8x128xf32> to vector<8x8x128xf32>
    %248 = vector.broadcast %99 : vector<1x1x128xf32> to vector<8x8x128xf32>
    %249 = arith.mulf %247, %248 : vector<8x8x128xf32>
    %250 = arith.addf %242, %249 : vector<8x8x128xf32>
    %251 = vector.extract_strided_slice %230 {offsets = [5, 0, 0], sizes = [8, 8, 128], strides = [1, 1, 1]} : vector<14x8x128xf32> to vector<8x8x128xf32>
    %252 = vector.broadcast %120 : vector<1x1x128xf32> to vector<8x8x128xf32>
    %253 = arith.mulf %251, %252 : vector<8x8x128xf32>
    %254 = arith.addf %246, %253 : vector<8x8x128xf32>
    %255 = vector.extract_strided_slice %230 {offsets = [6, 0, 0], sizes = [8, 8, 128], strides = [1, 1, 1]} : vector<14x8x128xf32> to vector<8x8x128xf32>
    %256 = vector.broadcast %141 : vector<1x1x128xf32> to vector<8x8x128xf32>
    %257 = arith.mulf %255, %256 : vector<8x8x128xf32>
    %258 = arith.addf %250, %257 : vector<8x8x128xf32>
    %259 = vector.extract_strided_slice %166 {offsets = [0, 0, 0], sizes = [14, 8, 128], strides = [1, 1, 1]} : vector<14x16x128xf32> to vector<14x8x128xf32>
    %260 = vector.extract_strided_slice %259 {offsets = [0, 0, 0], sizes = [8, 8, 128], strides = [1, 1, 1]} : vector<14x8x128xf32> to vector<8x8x128xf32>
    %261 = vector.broadcast %18 : vector<1x1x128xf32> to vector<8x8x128xf32>
    %262 = arith.mulf %260, %261 : vector<8x8x128xf32>
    %263 = arith.addf %254, %262 : vector<8x8x128xf32>
    %264 = vector.extract_strided_slice %259 {offsets = [1, 0, 0], sizes = [8, 8, 128], strides = [1, 1, 1]} : vector<14x8x128xf32> to vector<8x8x128xf32>
    %265 = vector.broadcast %39 : vector<1x1x128xf32> to vector<8x8x128xf32>
    %266 = arith.mulf %264, %265 : vector<8x8x128xf32>
    %267 = arith.addf %258, %266 : vector<8x8x128xf32>
    %268 = vector.extract_strided_slice %259 {offsets = [2, 0, 0], sizes = [8, 8, 128], strides = [1, 1, 1]} : vector<14x8x128xf32> to vector<8x8x128xf32>
    %269 = vector.broadcast %60 : vector<1x1x128xf32> to vector<8x8x128xf32>
    %270 = arith.mulf %268, %269 : vector<8x8x128xf32>
    %271 = arith.addf %263, %270 : vector<8x8x128xf32>
    %272 = vector.extract_strided_slice %259 {offsets = [3, 0, 0], sizes = [8, 8, 128], strides = [1, 1, 1]} : vector<14x8x128xf32> to vector<8x8x128xf32>
    %273 = vector.broadcast %81 : vector<1x1x128xf32> to vector<8x8x128xf32>
    %274 = arith.mulf %272, %273 : vector<8x8x128xf32>
    %275 = arith.addf %267, %274 : vector<8x8x128xf32>
    %276 = vector.extract_strided_slice %259 {offsets = [4, 0, 0], sizes = [8, 8, 128], strides = [1, 1, 1]} : vector<14x8x128xf32> to vector<8x8x128xf32>
    %277 = vector.broadcast %102 : vector<1x1x128xf32> to vector<8x8x128xf32>
    %278 = arith.mulf %276, %277 : vector<8x8x128xf32>
    %279 = arith.addf %271, %278 : vector<8x8x128xf32>
    %280 = vector.extract_strided_slice %259 {offsets = [5, 0, 0], sizes = [8, 8, 128], strides = [1, 1, 1]} : vector<14x8x128xf32> to vector<8x8x128xf32>
    %281 = vector.broadcast %123 : vector<1x1x128xf32> to vector<8x8x128xf32>
    %282 = arith.mulf %280, %281 : vector<8x8x128xf32>
    %283 = arith.addf %275, %282 : vector<8x8x128xf32>
    %284 = vector.extract_strided_slice %259 {offsets = [6, 0, 0], sizes = [8, 8, 128], strides = [1, 1, 1]} : vector<14x8x128xf32> to vector<8x8x128xf32>
    %285 = vector.broadcast %144 : vector<1x1x128xf32> to vector<8x8x128xf32>
    %286 = arith.mulf %284, %285 : vector<8x8x128xf32>
    %287 = arith.addf %279, %286 : vector<8x8x128xf32>
    %c15_i32 = arith.constant 15 : i32
    %288 = tpu.dynamic_rotate %166 by %c15_i32 dim 1 : vector<14x16x128xf32>, i32 -> vector<14x16x128xf32>
    %289 = vector.extract_strided_slice %288 {offsets = [0, 0, 0], sizes = [14, 8, 128], strides = [1, 1, 1]} : vector<14x16x128xf32> to vector<14x8x128xf32>
    %290 = vector.extract_strided_slice %289 {offsets = [0, 0, 0], sizes = [8, 8, 128], strides = [1, 1, 1]} : vector<14x8x128xf32> to vector<8x8x128xf32>
    %291 = vector.broadcast %21 : vector<1x1x128xf32> to vector<8x8x128xf32>
    %292 = arith.mulf %290, %291 : vector<8x8x128xf32>
    %293 = arith.addf %283, %292 : vector<8x8x128xf32>
    %294 = vector.extract_strided_slice %289 {offsets = [1, 0, 0], sizes = [8, 8, 128], strides = [1, 1, 1]} : vector<14x8x128xf32> to vector<8x8x128xf32>
    %295 = vector.broadcast %42 : vector<1x1x128xf32> to vector<8x8x128xf32>
    %296 = arith.mulf %294, %295 : vector<8x8x128xf32>
    %297 = arith.addf %287, %296 : vector<8x8x128xf32>
    %298 = vector.extract_strided_slice %289 {offsets = [2, 0, 0], sizes = [8, 8, 128], strides = [1, 1, 1]} : vector<14x8x128xf32> to vector<8x8x128xf32>
    %299 = vector.broadcast %63 : vector<1x1x128xf32> to vector<8x8x128xf32>
    %300 = arith.mulf %298, %299 : vector<8x8x128xf32>
    %301 = arith.addf %293, %300 : vector<8x8x128xf32>
    %302 = vector.extract_strided_slice %289 {offsets = [3, 0, 0], sizes = [8, 8, 128], strides = [1, 1, 1]} : vector<14x8x128xf32> to vector<8x8x128xf32>
    %303 = vector.broadcast %84 : vector<1x1x128xf32> to vector<8x8x128xf32>
    %304 = arith.mulf %302, %303 : vector<8x8x128xf32>
    %305 = arith.addf %297, %304 : vector<8x8x128xf32>
    %306 = vector.extract_strided_slice %289 {offsets = [4, 0, 0], sizes = [8, 8, 128], strides = [1, 1, 1]} : vector<14x8x128xf32> to vector<8x8x128xf32>
    %307 = vector.broadcast %105 : vector<1x1x128xf32> to vector<8x8x128xf32>
    %308 = arith.mulf %306, %307 : vector<8x8x128xf32>
    %309 = arith.addf %301, %308 : vector<8x8x128xf32>
    %310 = vector.extract_strided_slice %289 {offsets = [5, 0, 0], sizes = [8, 8, 128], strides = [1, 1, 1]} : vector<14x8x128xf32> to vector<8x8x128xf32>
    %311 = vector.broadcast %126 : vector<1x1x128xf32> to vector<8x8x128xf32>
    %312 = arith.mulf %310, %311 : vector<8x8x128xf32>
    %313 = arith.addf %305, %312 : vector<8x8x128xf32>
    %314 = vector.extract_strided_slice %289 {offsets = [6, 0, 0], sizes = [8, 8, 128], strides = [1, 1, 1]} : vector<14x8x128xf32> to vector<8x8x128xf32>
    %315 = vector.broadcast %147 : vector<1x1x128xf32> to vector<8x8x128xf32>
    %316 = arith.mulf %314, %315 : vector<8x8x128xf32>
    %317 = arith.addf %309, %316 : vector<8x8x128xf32>
    %c14_i32 = arith.constant 14 : i32
    %318 = tpu.dynamic_rotate %166 by %c14_i32 dim 1 : vector<14x16x128xf32>, i32 -> vector<14x16x128xf32>
    %319 = vector.extract_strided_slice %318 {offsets = [0, 0, 0], sizes = [14, 8, 128], strides = [1, 1, 1]} : vector<14x16x128xf32> to vector<14x8x128xf32>
    %320 = vector.extract_strided_slice %319 {offsets = [0, 0, 0], sizes = [8, 8, 128], strides = [1, 1, 1]} : vector<14x8x128xf32> to vector<8x8x128xf32>
    %321 = vector.broadcast %24 : vector<1x1x128xf32> to vector<8x8x128xf32>
    %322 = arith.mulf %320, %321 : vector<8x8x128xf32>
    %323 = arith.addf %313, %322 : vector<8x8x128xf32>
    %324 = vector.extract_strided_slice %319 {offsets = [1, 0, 0], sizes = [8, 8, 128], strides = [1, 1, 1]} : vector<14x8x128xf32> to vector<8x8x128xf32>
    %325 = vector.broadcast %45 : vector<1x1x128xf32> to vector<8x8x128xf32>
    %326 = arith.mulf %324, %325 : vector<8x8x128xf32>
    %327 = arith.addf %317, %326 : vector<8x8x128xf32>
    %328 = vector.extract_strided_slice %319 {offsets = [2, 0, 0], sizes = [8, 8, 128], strides = [1, 1, 1]} : vector<14x8x128xf32> to vector<8x8x128xf32>
    %329 = vector.broadcast %66 : vector<1x1x128xf32> to vector<8x8x128xf32>
    %330 = arith.mulf %328, %329 : vector<8x8x128xf32>
    %331 = arith.addf %323, %330 : vector<8x8x128xf32>
    %332 = vector.extract_strided_slice %319 {offsets = [3, 0, 0], sizes = [8, 8, 128], strides = [1, 1, 1]} : vector<14x8x128xf32> to vector<8x8x128xf32>
    %333 = vector.broadcast %87 : vector<1x1x128xf32> to vector<8x8x128xf32>
    %334 = arith.mulf %332, %333 : vector<8x8x128xf32>
    %335 = arith.addf %327, %334 : vector<8x8x128xf32>
    %336 = vector.extract_strided_slice %319 {offsets = [4, 0, 0], sizes = [8, 8, 128], strides = [1, 1, 1]} : vector<14x8x128xf32> to vector<8x8x128xf32>
    %337 = vector.broadcast %108 : vector<1x1x128xf32> to vector<8x8x128xf32>
    %338 = arith.mulf %336, %337 : vector<8x8x128xf32>
    %339 = arith.addf %331, %338 : vector<8x8x128xf32>
    %340 = vector.extract_strided_slice %319 {offsets = [5, 0, 0], sizes = [8, 8, 128], strides = [1, 1, 1]} : vector<14x8x128xf32> to vector<8x8x128xf32>
    %341 = vector.broadcast %129 : vector<1x1x128xf32> to vector<8x8x128xf32>
    %342 = arith.mulf %340, %341 : vector<8x8x128xf32>
    %343 = arith.addf %335, %342 : vector<8x8x128xf32>
    %344 = vector.extract_strided_slice %319 {offsets = [6, 0, 0], sizes = [8, 8, 128], strides = [1, 1, 1]} : vector<14x8x128xf32> to vector<8x8x128xf32>
    %345 = vector.broadcast %150 : vector<1x1x128xf32> to vector<8x8x128xf32>
    %346 = arith.mulf %344, %345 : vector<8x8x128xf32>
    %347 = arith.addf %339, %346 : vector<8x8x128xf32>
    %c13_i32 = arith.constant 13 : i32
    %348 = tpu.dynamic_rotate %166 by %c13_i32 dim 1 : vector<14x16x128xf32>, i32 -> vector<14x16x128xf32>
    %349 = vector.extract_strided_slice %348 {offsets = [0, 0, 0], sizes = [14, 8, 128], strides = [1, 1, 1]} : vector<14x16x128xf32> to vector<14x8x128xf32>
    %350 = vector.extract_strided_slice %349 {offsets = [0, 0, 0], sizes = [8, 8, 128], strides = [1, 1, 1]} : vector<14x8x128xf32> to vector<8x8x128xf32>
    %351 = vector.broadcast %27 : vector<1x1x128xf32> to vector<8x8x128xf32>
    %352 = arith.mulf %350, %351 : vector<8x8x128xf32>
    %353 = arith.addf %343, %352 : vector<8x8x128xf32>
    %354 = vector.extract_strided_slice %349 {offsets = [1, 0, 0], sizes = [8, 8, 128], strides = [1, 1, 1]} : vector<14x8x128xf32> to vector<8x8x128xf32>
    %355 = vector.broadcast %48 : vector<1x1x128xf32> to vector<8x8x128xf32>
    %356 = arith.mulf %354, %355 : vector<8x8x128xf32>
    %357 = arith.addf %347, %356 : vector<8x8x128xf32>
    %358 = vector.extract_strided_slice %349 {offsets = [2, 0, 0], sizes = [8, 8, 128], strides = [1, 1, 1]} : vector<14x8x128xf32> to vector<8x8x128xf32>
    %359 = vector.broadcast %69 : vector<1x1x128xf32> to vector<8x8x128xf32>
    %360 = arith.mulf %358, %359 : vector<8x8x128xf32>
    %361 = arith.addf %353, %360 : vector<8x8x128xf32>
    %362 = vector.extract_strided_slice %349 {offsets = [3, 0, 0], sizes = [8, 8, 128], strides = [1, 1, 1]} : vector<14x8x128xf32> to vector<8x8x128xf32>
    %363 = vector.broadcast %90 : vector<1x1x128xf32> to vector<8x8x128xf32>
    %364 = arith.mulf %362, %363 : vector<8x8x128xf32>
    %365 = arith.addf %357, %364 : vector<8x8x128xf32>
    %366 = vector.extract_strided_slice %349 {offsets = [4, 0, 0], sizes = [8, 8, 128], strides = [1, 1, 1]} : vector<14x8x128xf32> to vector<8x8x128xf32>
    %367 = vector.broadcast %111 : vector<1x1x128xf32> to vector<8x8x128xf32>
    %368 = arith.mulf %366, %367 : vector<8x8x128xf32>
    %369 = arith.addf %361, %368 : vector<8x8x128xf32>
    %370 = vector.extract_strided_slice %349 {offsets = [5, 0, 0], sizes = [8, 8, 128], strides = [1, 1, 1]} : vector<14x8x128xf32> to vector<8x8x128xf32>
    %371 = vector.broadcast %132 : vector<1x1x128xf32> to vector<8x8x128xf32>
    %372 = arith.mulf %370, %371 : vector<8x8x128xf32>
    %373 = arith.addf %365, %372 : vector<8x8x128xf32>
    %374 = vector.extract_strided_slice %349 {offsets = [6, 0, 0], sizes = [8, 8, 128], strides = [1, 1, 1]} : vector<14x8x128xf32> to vector<8x8x128xf32>
    %375 = vector.broadcast %153 : vector<1x1x128xf32> to vector<8x8x128xf32>
    %376 = arith.mulf %374, %375 : vector<8x8x128xf32>
    %377 = arith.addf %369, %376 : vector<8x8x128xf32>
    %378 = arith.addf %377, %373 : vector<8x8x128xf32>
    %379 = vector.shape_cast %378 : vector<8x8x128xf32> to vector<64x128xf32>
    %380 = vector.broadcast %6 : vector<1x128xf32> to vector<64x128xf32>
    %381 = arith.addf %379, %380 : vector<64x128xf32>
    %382 = arith.index_cast %c0_i32 : i32 to index
    %c1_24 = arith.constant 1 : index
    %c0_25 = arith.constant 0 : index
    %383 = vector.load %arg4[%382, %c1_24, %c0_25] : memref<1x65x128xf32, #tpu.memory_space<vmem>>, vector<1x64x128xf32>
    %384 = vector.shape_cast %383 : vector<1x64x128xf32> to vector<64x128xf32>
    %385 = vector.shape_cast %381 : vector<64x128xf32> to vector<1x64x128xf32>
    tpu.vector_store %arg4[%382, %c1_24, %c0_25], %385 {strides = array<i32>} : memref<1x65x128xf32, #tpu.memory_space<vmem>>, vector<1x64x128xf32>,
    %c1_i32_26 = arith.constant 1 : i32
    return
  }
  func.func @transform_0(%arg0: i32) -> (i32, i32, i32) {
    %c0_i32 = arith.constant 0 : i32
    %c0_i32_0 = arith.constant 0 : i32
    %c0_i32_1 = arith.constant 0 : i32
    return %arg0, %c0_i32, %c0_i32_0 : i32, i32, i32
  }
  func.func @transform_1(%arg0: i32) -> (i32, i32, i32) {
    %c0_i32 = arith.constant 0 : i32
    %c0_i32_0 = arith.constant 0 : i32
    %c0_i32_1 = arith.constant 0 : i32
    %c0_i32_2 = arith.constant 0 : i32
    return %c0_i32, %c0_i32_0, %c0_i32_1 : i32, i32, i32
  }
  func.func @transform_2(%arg0: i32) -> (i32, i32) {
    %c0_i32 = arith.constant 0 : i32
    %c0_i32_0 = arith.constant 0 : i32
    %c0_i32_1 = arith.constant 0 : i32
    return %c0_i32, %c0_i32_0 : i32, i32
  }
  func.func @transform_3(%arg0: i32) -> (i32, i32, i32) {
    %c0_i32 = arith.constant 0 : i32
    %c0_i32_0 = arith.constant 0 : i32
    %c0_i32_1 = arith.constant 0 : i32
    return %arg0, %c0_i32, %c0_i32_0 : i32, i32, i32
  }
}

</mosaic_0001>

<bundles_post_ra>
// kernel: ppeg_forward.1
= control target key start
LH: loop header
LB: loop body
LE: loop exit
PB: predicated region body
PF: predicated region fallthrough
CT: control target
= control target key end

     0   :  { %s1636_s12 = smov 0   ;;  %s2721_s0 = inlined_call_operand.vmem [shape: f32[2,65,128], index: 0, kind: input, shape index: {}]   ;;  %s2722_s1 = inlined_call_operand.vmem [shape: f32[7,7,128], index: 1, kind: input, shape index: {}]   ;;  %s2723_s2 = inlined_call_operand.vmem [shape: f32[1,128], index: 2, kind: input, shape index: {}]   ;;  %s2724_s3 = inlined_call_operand.vmem [shape: f32[2,65,128], index: 3, kind: output, shape index: {}]  }
   0x1 LB: > { %s1572_s13 = sadd.s32 4294967295, %s1613_s12   ;;  %p1576_p0 = scmp.ge.s32.totalorder %s1613_s12, 1  ;;  %s1613_s12 = sphi %s1636_s12, %s13_s12  }
   0x2   : > { %p137_p1 = scmp.lt.s32.totalorder %s1613_s12, 3 }
   0x4   : > { %p138_p2 = pnand %p1576_p0, %p137_p1 }
   0x6   : > { %141 = sbr.rel (%p138_p2) target bundleno = 248 (0xf8), region = 32 }
   0xd   : > { %p161_p3 = scmp.lt.s32.totalorder %s1572_s13, 1  ;;  %v275_v0 = vlaneseq  ;;  %v1649_v2 = vld [vmem:[%s2722_s1] sm:$0x7f]  ;;  %v1664_v3 = vld [vmem:[%s2722_s1 + $0x8] sm:$0x7f]  ;;  %v2725_v5 = vmov 0.0  }
   0xe   : > { %2778 = vst [vmem:[#allocation4_spill] sm:$0xff] %v1649_v2  ;;  %2779 = vst [vmem:[#allocation5_spill] sm:$0xff] %v1664_v3  ;;  %v1669_v4 = vld [vmem:[%s2722_s1 + $0x10] sm:$0x7f]  ;;  %v1672_v6 = vrot.slane %v2725_v5, 5  ;;  %v1678_v8 = vrot.slane %v2725_v5, 6 }
   0xf   : > { %s2870_s13 = smov (!%p161_p3, %s1572_s13), 1  ;;  %v1644_v1 = vshrl.u32 %v275_v0, 7  ;;  %2780 = vst [vmem:[#allocation6_spill] sm:$0xff] %v1669_v4  ;;  %v1681_v9 = vrot.slane %v2725_v5, 7  ;;  %v1692_v13 = vrot.slane %v2725_v5, 1 }
  0x10   : > { %s1582_s14 = smul.u32 72, %s2870_s13  ;;  %2781 = vst [vmem:[#allocation7_spill] sm:$0xff] %v1678_v8  ;;  %v1697_v14 = vld [vmem:[%s2722_s1 + $0x18] sm:$0x7f]  ;;  %v1702_v15 = vld [vmem:[%s2722_s1 + $0x20] sm:$0x7f] }
  0x11   : > { %2777 = vst [vmem:[#allocation3_spill] sm:$0xff] %v1644_v1  ;;  %v1675_v7 = vsub.s32 0, %v1644_v1  ;;  %2782 = vst [vmem:[#allocation8_spill] sm:$0xff] %v1681_v9  ;;  %vm277_vm0 = vcmp.lt.s32.totalorder %v1644_v1, 3  ;;  %v1717_v21 = vsub.s32 1, %v1644_v1  ;;  %v1746_v35 = vsub.s32 2, %v1644_v1 }
  0x12   : > { %s1654_s19 = scalar_lea.vmem %s2721_s0, %s1582_s14  ;;  %s1659_s22 = scalar_lea.vmem %s2724_s3, %s1582_s14  ;;  %2783 = vst [vmem:[#allocation9_spill] sm:$0xff] %v1692_v13  ;;  %2784 = vst [vmem:[#allocation10_spill] sm:$0xff] %v1697_v14  ;;  %v1734_v28 = vld [vmem:[%s2722_s1 + $0x28] sm:$0x7f]  ;;  %v1749_v36 = vsub.s32 3, %v1644_v1  ;;  %vm460_vm1 = vcmp.lt.s32.totalorder %v1644_v1, 2 }
  0x13   : > { %v201_v10 = vld [vmem:[%s1654_s19] sm:$0x1]  ;;  %v1685_v11 = vld [vmem:[%s1654_s19 + $0x1] sm:$0xff]  ;;  %v1688_v12 = vld [vmem:[%s1654_s19 + $0x9] sm:$0xff]  ;;  %2785 = vst [vmem:[#allocation11_spill] sm:$0xff] %v1702_v15  ;;  %v295_v32 = vrot.slane %v1649_v2, %v1675_v7  ;;  %v315_v33 = vrot.slane %v1664_v3, %v1675_v7  ;;  %v335_v34 = vrot.slane %v1669_v4, %v1675_v7  ;;  %v355_v42 = vrot.slane %v1697_v14, %v1675_v7 }
  0x14   : > { %202 = vst [vmem:[%s1659_s22] sm:$0x1] %v201_v10  ;;  %v1706_v16 = vld [vmem:[%s1654_s19 + $0x11] sm:$0xff]  ;;  %v1709_v17 = vld [vmem:[%s1654_s19 + $0x19] sm:$0xff]  ;;  %v1712_v18 = vld [vmem:[%s1654_s19 + $0x21] sm:$0xff]  ;;  %v250_v19 = vrot.slane %v1685_v11, 5  ;;  %v251_v20 = vrot.slane %v1688_v12, 5  ;;  %v375_v43 = vrot.slane %v1702_v15, %v1675_v7  ;;  %v1778_v44 = vrot.slane %v1734_v28, %v1675_v7 }
  0x15   : > { %2786 = vst [vmem:[#allocation12_spill] sm:$0xff] %v1706_v16  ;;  %2787 = vst [vmem:[#allocation13_spill] sm:$0xff] %v1709_v17  ;;  %v1720_v22 = vld [vmem:[%s1654_s19 + $0x29] sm:$0xff]  ;;  %v1723_v23 = vld [vmem:[%s1654_s19 + $0x31] sm:$0xff]  ;;  %v252_v25 = vrot.slane %v1706_v16, 5  ;;  %v253_v26 = vrot.slane %v1709_v17, 5  ;;  %v296_v48 = vmul.f32 %v295_v32, %v1672_v6  ;;  %v316_v54 = vmul.f32 %v315_v33, %v1672_v6 }
  0x16   : > { %2788 = vst [vmem:[#allocation14_spill] sm:$0xff] %v1712_v18  ;;  %2789 = vst [vmem:[#allocation15_spill] sm:$0xff] %v1717_v21  ;;  %v1726_v24 = vld [vmem:[%s1654_s19 + $0x39] sm:$0xff]  ;;  %v254_v27 = vrot.slane %v1712_v18, 5  ;;  %v255_v29 = vrot.slane %v1720_v22, 5  ;;  %v256_v30 = vrot.slane %v1723_v23, 5  ;;  %v281_v37 = vsel %vm277_vm0, %v1672_v6, %v250_v19 }
  0x17   : > { %2790 = vst [vmem:[#allocation16_spill] sm:$0xff] %v1720_v22  ;;  %2791 = vst [vmem:[#allocation17_spill] sm:$0xff] %v1723_v23  ;;  %v257_v31 = vrot.slane %v1726_v24, 5  ;;  %v282_v38 = vsel %vm277_vm0, %v1672_v6, %v251_v20  ;;  %v1760_v39 = vsel %vm277_vm0, %v1672_v6, %v252_v25  ;;  %v1765_v40 = vsel %vm277_vm0, %v1672_v6, %v253_v26 }
  0x18   : > { %2792 = vst [vmem:[#allocation18_spill] sm:$0xff] %v1726_v24  ;;  %2793 = vst [vmem:[#allocation19_spill] sm:$0xff] %v1734_v28  ;;  %v1770_v41 = vsel %vm277_vm0, %v1672_v6, %v254_v27  ;;  %v1783_v45 = vsel %vm277_vm0, %v1672_v6, %v255_v29  ;;  %v1788_v46 = vsel %vm277_vm0, %v1672_v6, %v256_v30  ;;  %vm643_vm2 = vcmp.lt.s32.totalorder %v1644_v1, 1 }
  0x19   : > { %2794 = vst [vmem:[#allocation20_spill] sm:$0xff] %v1746_v35  ;;  %2795 = vst [vmem:[#allocation21_spill] sm:$0xff] %v1749_v36  ;;  %v1793_v47 = vsel %vm277_vm0, %v1672_v6, %v257_v31  ;;  %v299_v49 = vmul.f32 %v295_v32, %v281_v37  ;;  %v300_v50 = vmul.f32 %v295_v32, %v282_v38 }
  0x1a   : > { %v301_v51 = vmul.f32 %v295_v32, %v1760_v39  ;;  %v302_v52 = vmul.f32 %v295_v32, %v1765_v40  ;;  %v303_v53 = vmul.f32 %v295_v32, %v1770_v41  ;;  %v336_v55 = vmul.f32 %v335_v34, %v1672_v6 }
  0x1b   : > { %v337_v56 = vmul.f32 %v335_v34, %v281_v37  ;;  %v318_v57 = vmul.f32 %v315_v33, %v281_v37  ;;  %v319_v58 = vmul.f32 %v315_v33, %v282_v38  ;;  %v320_v59 = vmul.f32 %v315_v33, %v1760_v39 }
  0x1c   : > { %v321_v60 = vmul.f32 %v315_v33, %v1765_v40  ;;  %v322_v61 = vmul.f32 %v315_v33, %v1770_v41  ;;  %v338_v62 = vmul.f32 %v335_v34, %v282_v38  ;;  %v339_v63 = vmul.f32 %v335_v34, %v1760_v39 }
  0x1d   : > { %v340_v0 = vmul.f32 %v335_v34, %v1765_v40  ;;  %v323_v10 = vmul.f32 %v315_v33, %v1783_v45  ;;  %v341_v19 = vmul.f32 %v335_v34, %v1770_v41  ;;  %v342_v20 = vmul.f32 %v335_v34, %v1783_v45 }
  0x1e   : > { %v343_v25 = vmul.f32 %v335_v34, %v1788_v46  ;;  %v344_v26 = vadd.f32 %v336_v55, %v296_v48  ;;  %v345_v27 = vadd.f32 %v337_v56, %v296_v48  ;;  %v356_v29 = vmul.f32 %v355_v42, %v281_v37 }
  0x1f   : > { %v357_v30 = vmul.f32 %v355_v42, %v282_v38  ;;  %v358_v31 = vmul.f32 %v355_v42, %v1760_v39  ;;  %v359_v32 = vmul.f32 %v355_v42, %v1765_v40  ;;  %v360_v5 = vmul.f32 %v355_v42, %v1770_v41 }
  0x20   : > { %v361_v13 = vmul.f32 %v355_v42, %v1783_v45  ;;  %v346_v36 = vadd.f32 %v338_v62, %v296_v48  ;;  %v347_v33 = vadd.f32 %v339_v63, %v299_v49  ;;  %v348_v35 = vadd.f32 %v340_v0, %v300_v50  ;;  %v1820_v48 = vld [vmem:[%s2722_s1 + $0x30] sm:$0x7f] }
  0x21   : > { %v362_v9 = vmul.f32 %v355_v42, %v1788_v46  ;;  %v349_v28 = vadd.f32 %v341_v19, %v301_v51  ;;  %v350_v15 = vadd.f32 %v342_v20, %v302_v52  ;;  %v351_v34 = vadd.f32 %v343_v25, %v303_v53  ;;  %2796 = vst [vmem:[#allocation22_spill] sm:$0xff] %v1820_v48 }
  0x22   : > { %v363_v55 = vmul.f32 %v355_v42, %v1793_v47  ;;  %v364_v37 = vadd.f32 %v356_v29, %v316_v54  ;;  %v365_v56 = vadd.f32 %v357_v30, %v316_v54  ;;  %v376_v14 = vmul.f32 %v375_v43, %v282_v38 }
  0x23   : > { %v377_v4 = vmul.f32 %v375_v43, %v1760_v39  ;;  %v366_v3 = vadd.f32 %v358_v31, %v318_v57  ;;  %v367_v2 = vadd.f32 %v359_v32, %v319_v58  ;;  %v368_v21 = vadd.f32 %v360_v5, %v320_v59 }
  0x24   : > { %v369_v8 = vadd.f32 %v361_v13, %v321_v60  ;;  %v370_v49 = vadd.f32 %v362_v9, %v322_v61  ;;  %v378_v50 = vmul.f32 %v375_v43, %v1765_v40  ;;  %v379_v51 = vmul.f32 %v375_v43, %v1770_v41 }
  0x25   : > { %v380_v42 = vmul.f32 %v375_v43, %v1783_v45  ;;  %v371_v52 = vadd.f32 %v363_v55, %v323_v10  ;;  %v381_v38 = vmul.f32 %v375_v43, %v1788_v46  ;;  %v382_v53 = vmul.f32 %v375_v43, %v1793_v47 }
  0x26   : > { %v383_v5 = vmul.f32 %v375_v43, %v1672_v6  ;;  %v384_v13 = vadd.f32 %v376_v14, %v344_v26  ;;  %v385_v54 = vadd.f32 %v377_v4, %v345_v27  ;;  %v396_v57 = vmul.f32 %v1778_v44, %v1760_v39 }
  0x27   : > { %v397_v9 = vmul.f32 %v1778_v44, %v1765_v40  ;;  %v398_v58 = vmul.f32 %v1778_v44, %v1770_v41  ;;  %v399_v59 = vmul.f32 %v1778_v44, %v1783_v45  ;;  %v400_v60 = vmul.f32 %v1778_v44, %v1788_v46 }
  0x28   : > { %v415_v4 = vrot.slane %v1820_v48, %v1675_v7  ;;  %v386_v14 = vadd.f32 %v378_v50, %v346_v36  ;;  %v387_v43 = vadd.f32 %v379_v51, %v347_v33  ;;  %v388_v39 = vadd.f32 %v380_v42, %v348_v35  ;;  %v2798_v51 = vld [vmem:[#allocation15_spill] sm:$0xff]  ;;  %v2799_v42 = vld [vmem:[#allocation4_spill] sm:$0xff] }
  0x29   : > { %v401_v61 = vmul.f32 %v1778_v44, %v1793_v47  ;;  %v389_v62 = vadd.f32 %v381_v38, %v349_v28  ;;  %v390_v63 = vadd.f32 %v382_v53, %v350_v15  ;;  %v402_v0 = vmul.f32 %v1778_v44, %v1672_v6 }
  0x2a   : > { %v416_v10 = vmul.f32 %v415_v4, %v1765_v40  ;;  %v391_v19 = vadd.f32 %v383_v5, %v351_v34  ;;  %v404_v20 = vadd.f32 %v396_v57, %v364_v37  ;;  %v405_v25 = vadd.f32 %v397_v9, %v365_v56 }
  0x2b   : > { %v417_v26 = vmul.f32 %v415_v4, %v1770_v41  ;;  %v406_v27 = vadd.f32 %v398_v58, %v366_v3  ;;  %v407_v7 = vadd.f32 %v399_v59, %v367_v2  ;;  %v408_v36 = vadd.f32 %v400_v60, %v368_v21 }
  0x2c   : > { %v418_v35 = vmul.f32 %v415_v4, %v1783_v45  ;;  %v409_v29 = vadd.f32 %v401_v61, %v369_v8  ;;  %v419_v30 = vmul.f32 %v415_v4, %v1788_v46  ;;  %v420_v15 = vmul.f32 %v415_v4, %v1793_v47 }
  0x2d   : > { %v421_v28 = vmul.f32 %v415_v4, %v1672_v6  ;;  %v410_v44 = vadd.f32 %v402_v0, %v370_v49  ;;  %v411_v31 = vadd.f32 %v402_v0, %v371_v52  ;;  %v424_v40 = vadd.f32 %v416_v10, %v384_v13  ;;  %v2797_v49 = vld [vmem:[#allocation7_spill] sm:$0xff]  ;;  %v2800_v13 = vld [vmem:[#allocation5_spill] sm:$0xff] }
  0x2e   : > { %v435_v32 = vrot.slane %v1685_v11, 6  ;;  %v425_v33 = vadd.f32 %v417_v26, %v385_v54  ;;  %v436_v41 = vrot.slane %v1688_v12, 6  ;;  %v437_v2 = vrot.slane %v1706_v16, 6  ;;  %v2803_v10 = vld [vmem:[#allocation11_spill] sm:$0xff] }
  0x2f   : > { %v438_v3 = vrot.slane %v1709_v17, 6  ;;  %v426_v21 = vadd.f32 %v418_v35, %v386_v14  ;;  %v439_v8 = vrot.slane %v1712_v18, 6  ;;  %v440_v45 = vrot.slane %v1720_v22, 6  ;;  %v2801_v14 = vld [vmem:[#allocation6_spill] sm:$0xff] }
  0x30   : > { %v441_v46 = vrot.slane %v1723_v23, 6  ;;  %v427_v6 = vadd.f32 %v419_v30, %v387_v43  ;;  %v428_v47 = vadd.f32 %v420_v15, %v388_v39  ;;  %v429_v34 = vadd.f32 %v421_v28, %v389_v62  ;;  %v2802_v39 = vld [vmem:[#allocation10_spill] sm:$0xff]  ;;  %v2804_v30 = vld [vmem:[#allocation19_spill] sm:$0xff] }
  0x31   : > { %v442_v55 = vrot.slane %v1726_v24, 6  ;;  %v430_v37 = vadd.f32 %v421_v28, %v390_v63  ;;  %v431_v56 = vadd.f32 %v421_v28, %v391_v19  ;;  %v464_v50 = vsel %vm460_vm1, %v2797_v49, %v435_v32 }
  0x32   : > { %v478_v52 = vrot.slane %v2799_v42, %v2798_v51  ;;  %v1867_v38 = vsel %vm460_vm1, %v2797_v49, %v436_v41  ;;  %v1872_v53 = vsel %vm460_vm1, %v2797_v49, %v437_v2  ;;  %v1877_v5 = vsel %vm460_vm1, %v2797_v49, %v438_v3 }
  0x33   : > { %v498_v54 = vrot.slane %v2800_v13, %v2798_v51  ;;  %v1884_v57 = vsel %vm460_vm1, %v2797_v49, %v439_v8  ;;  %v1889_v9 = vsel %vm460_vm1, %v2797_v49, %v440_v45  ;;  %v1894_v58 = vsel %vm460_vm1, %v2797_v49, %v441_v46 }
  0x34   : > { %v479_v59 = vmul.f32 %v478_v52, %v2797_v49  ;;  %v1900_v60 = vsel %vm460_vm1, %v2797_v49, %v442_v55  ;;  %v482_v4 = vmul.f32 %v478_v52, %v464_v50  ;;  %v518_v43 = vrot.slane %v2801_v14, %v2798_v51 }
  0x35   : > { %v538_v61 = vrot.slane %v2802_v39, %v2798_v51  ;;  %v483_v62 = vmul.f32 %v478_v52, %v1867_v38  ;;  %v484_v63 = vmul.f32 %v478_v52, %v1872_v53  ;;  %v485_v0 = vmul.f32 %v478_v52, %v1877_v5 }
  0x36   : > { %v1911_v19 = vrot.slane %v2803_v10, %v2798_v51  ;;  %v486_v26 = vmul.f32 %v478_v52, %v1884_v57  ;;  %v499_v35 = vmul.f32 %v498_v54, %v2797_v49  ;;  %v1917_v15 = vrot.slane %v2804_v30, %v2798_v51 }
  0x37   : > { %v1921_v28 = vrot.slane %v1820_v48, %v2798_v51  ;;  %v487_v32 = vadd.f32 %v479_v59, %v404_v20  ;;  %v488_v41 = vadd.f32 %v479_v59, %v405_v25  ;;  %v501_v2 = vmul.f32 %v498_v54, %v464_v50 }
  0x38   : > { %v502_v3 = vmul.f32 %v498_v54, %v1867_v38  ;;  %v489_v8 = vadd.f32 %v479_v59, %v406_v27  ;;  %v490_v45 = vadd.f32 %v482_v4, %v407_v7  ;;  %v503_v46 = vmul.f32 %v498_v54, %v1872_v53 }
  0x39   : > { %v504_v55 = vmul.f32 %v498_v54, %v1877_v5  ;;  %v491_v52 = vadd.f32 %v483_v62, %v408_v36  ;;  %v492_v10 = vadd.f32 %v484_v63, %v409_v29  ;;  %v493_v39 = vadd.f32 %v485_v0, %v410_v44 }
  0x3a   : > { %v505_v30 = vmul.f32 %v498_v54, %v1884_v57  ;;  %v494_v14 = vadd.f32 %v486_v26, %v411_v31  ;;  %v506_v51 = vmul.f32 %v498_v54, %v1889_v9  ;;  %v507_v48 = vadd.f32 %v499_v35, %v424_v40 }
  0x3b   : > { %v519_v20 = vmul.f32 %v518_v43, %v2797_v49  ;;  %v508_v25 = vadd.f32 %v499_v35, %v425_v33  ;;  %v509_v13 = vadd.f32 %v501_v2, %v426_v21  ;;  %v510_v42 = vadd.f32 %v502_v3, %v427_v6 }
  0x3c   : > { %v520_v27 = vmul.f32 %v518_v43, %v464_v50  ;;  %v511_v7 = vadd.f32 %v503_v46, %v428_v47  ;;  %v512_v59 = vadd.f32 %v504_v55, %v429_v34  ;;  %v521_v4 = vmul.f32 %v518_v43, %v1867_v38 }
  0x3d   : > { %v522_v36 = vmul.f32 %v518_v43, %v1872_v53  ;;  %v513_v29 = vadd.f32 %v505_v30, %v430_v37  ;;  %v523_v44 = vmul.f32 %v518_v43, %v1877_v5  ;;  %v524_v31 = vmul.f32 %v518_v43, %v1884_v57 }
  0x3e   : > { %v525_v54 = vmul.f32 %v518_v43, %v1889_v9  ;;  %v514_v40 = vadd.f32 %v506_v51, %v431_v56  ;;  %v526_v62 = vmul.f32 %v518_v43, %v1894_v58  ;;  %v527_v33 = vadd.f32 %v519_v20, %v487_v32 }
  0x3f   : > { %v539_v21 = vmul.f32 %v538_v61, %v464_v50  ;;  %v528_v6 = vadd.f32 %v520_v27, %v488_v41  ;;  %v540_v47 = vmul.f32 %v538_v61, %v1867_v38  ;;  %v541_v34 = vmul.f32 %v538_v61, %v1872_v53 }
  0x40   : > { %v542_v63 = vmul.f32 %v538_v61, %v1877_v5  ;;  %v529_v0 = vadd.f32 %v521_v4, %v489_v8  ;;  %v530_v37 = vadd.f32 %v522_v36, %v490_v45  ;;  %v543_v26 = vmul.f32 %v538_v61, %v1884_v57 }
  0x41   : > { %v544_v35 = vmul.f32 %v538_v61, %v1889_v9  ;;  %v531_v30 = vadd.f32 %v523_v44, %v491_v52  ;;  %v532_v2 = vadd.f32 %v524_v31, %v492_v10  ;;  %v533_v56 = vadd.f32 %v525_v54, %v493_v39 }
  0x42   : > { %v545_v43 = vmul.f32 %v538_v61, %v1894_v58  ;;  %v534_v32 = vadd.f32 %v526_v62, %v494_v14  ;;  %v546_v50 = vmul.f32 %v538_v61, %v1900_v60  ;;  %v547_v41 = vadd.f32 %v539_v21, %v507_v48 }
  0x43   : > { %v559_v3 = vmul.f32 %v1911_v19, %v1867_v38  ;;  %v548_v46 = vadd.f32 %v540_v47, %v508_v25  ;;  %v549_v55 = vadd.f32 %v541_v34, %v509_v13  ;;  %v550_v8 = vadd.f32 %v542_v63, %v510_v42 }
  0x44   : > { %v560_v45 = vmul.f32 %v1911_v19, %v1872_v53  ;;  %v551_v51 = vadd.f32 %v543_v26, %v511_v7  ;;  %v552_v20 = vadd.f32 %v544_v35, %v512_v59  ;;  %v561_v39 = vmul.f32 %v1911_v19, %v1877_v5 }
  0x45   : > { %v562_v14 = vmul.f32 %v1911_v19, %v1884_v57  ;;  %v553_v10 = vadd.f32 %v545_v43, %v513_v29  ;;  %v563_v48 = vmul.f32 %v1911_v19, %v1889_v9  ;;  %v564_v38 = vmul.f32 %v1911_v19, %v1894_v58 }
  0x46   : > { %v565_v42 = vmul.f32 %v1911_v19, %v1900_v60  ;;  %v554_v13 = vadd.f32 %v546_v50, %v514_v40  ;;  %v566_v61 = vmul.f32 %v1911_v19, %v2797_v49  ;;  %v567_v52 = vadd.f32 %v559_v3, %v527_v33 }
  0x47   : > { %v579_v25 = vmul.f32 %v1917_v15, %v1872_v53  ;;  %v568_v27 = vadd.f32 %v560_v45, %v528_v6  ;;  %v580_v7 = vmul.f32 %v1917_v15, %v1877_v5  ;;  %v581_v59 = vmul.f32 %v1917_v15, %v1884_v57  ;;  %v2805_v45 = vld [vmem:[#allocation8_spill] sm:$0xff] }
  0x48   : > { %v582_v4 = vmul.f32 %v1917_v15, %v1889_v9  ;;  %v569_v36 = vadd.f32 %v561_v39, %v529_v0  ;;  %v570_v29 = vadd.f32 %v562_v14, %v530_v37  ;;  %v583_v19 = vmul.f32 %v1917_v15, %v1894_v58  ;;  %v2807_v39 = vld [vmem:[#allocation4_spill] sm:$0xff] }
  0x49   : > { %v584_v53 = vmul.f32 %v1917_v15, %v1900_v60  ;;  %v571_v44 = vadd.f32 %v563_v48, %v531_v30  ;;  %v572_v31 = vadd.f32 %v564_v38, %v532_v2  ;;  %v573_v54 = vadd.f32 %v565_v42, %v533_v56  ;;  %v2808_v42 = vld [vmem:[#allocation5_spill] sm:$0xff] }
  0x4a   : > { %v585_v40 = vmul.f32 %v1917_v15, %v2797_v49  ;;  %v574_v62 = vadd.f32 %v566_v61, %v534_v32  ;;  %v587_v33 = vadd.f32 %v579_v25, %v547_v41  ;;  %v599_v21 = vmul.f32 %v1921_v28, %v1877_v5 }
  0x4b   : > { %v600_v6 = vmul.f32 %v1921_v28, %v1884_v57  ;;  %v588_v47 = vadd.f32 %v580_v7, %v548_v46  ;;  %v589_v34 = vadd.f32 %v581_v59, %v549_v55  ;;  %v590_v63 = vadd.f32 %v582_v4, %v550_v8 }
  0x4c   : > { %v601_v0 = vmul.f32 %v1921_v28, %v1889_v9  ;;  %v591_v37 = vadd.f32 %v583_v19, %v551_v51  ;;  %v592_v26 = vadd.f32 %v584_v53, %v552_v20  ;;  %v602_v35 = vmul.f32 %v1921_v28, %v1894_v58  ;;  %v2806_v20 = vld [vmem:[#allocation20_spill] sm:$0xff]  ;;  %v2809_v19 = vld [vmem:[#allocation6_spill] sm:$0xff] }
  0x4d   : > { %v603_v15 = vmul.f32 %v1921_v28, %v1900_v60  ;;  %v593_v30 = vadd.f32 %v585_v40, %v553_v10  ;;  %v594_v2 = vadd.f32 %v585_v40, %v554_v13  ;;  %v618_v5 = vrot.slane %v1685_v11, 7 }
  0x4e   : > { %v619_v57 = vrot.slane %v1688_v12, 7  ;;  %v604_v56 = vmul.f32 %v1921_v28, %v2797_v49  ;;  %v607_v43 = vadd.f32 %v599_v21, %v567_v52  ;;  %v608_v32 = vadd.f32 %v600_v6, %v568_v27 }
  0x4f   : > { %v620_v9 = vrot.slane %v1706_v16, 7  ;;  %v609_v50 = vadd.f32 %v601_v0, %v569_v36  ;;  %v621_v41 = vrot.slane %v1709_v17, 7  ;;  %v622_v58 = vrot.slane %v1712_v18, 7  ;;  %v2812_v0 = vld [vmem:[#allocation19_spill] sm:$0xff] }
  0x50   : > { %v623_v60 = vrot.slane %v1720_v22, 7  ;;  %v610_v3 = vadd.f32 %v602_v35, %v570_v29  ;;  %v611_v46 = vadd.f32 %v603_v15, %v571_v44  ;;  %v624_v55 = vrot.slane %v1723_v23, 7  ;;  %v2810_v44 = vld [vmem:[#allocation10_spill] sm:$0xff] }
  0x51   : > { %v625_v8 = vrot.slane %v1726_v24, 7  ;;  %v647_v49 = vsel %vm643_vm2, %v2805_v45, %v618_v5  ;;  %v1999_v28 = vsel %vm643_vm2, %v2805_v45, %v619_v57  ;;  %v2004_v51 = vsel %vm643_vm2, %v2805_v45, %v620_v9 }
  0x52   : > { %v661_v14 = vrot.slane %v2807_v39, %v2806_v20  ;;  %v612_v10 = vadd.f32 %v604_v56, %v572_v31  ;;  %v613_v48 = vadd.f32 %v604_v56, %v573_v54  ;;  %v614_v38 = vadd.f32 %v604_v56, %v574_v62  ;;  %v2811_v54 = vld [vmem:[#allocation11_spill] sm:$0xff] }
  0x53   : > { %v681_v13 = vrot.slane %v2808_v42, %v2806_v20  ;;  %v2013_v61 = vsel %vm643_vm2, %v2805_v45, %v621_v41  ;;  %v2018_v52 = vsel %vm643_vm2, %v2805_v45, %v622_v58  ;;  %v2023_v25 = vsel %vm643_vm2, %v2805_v45, %v623_v60 }
  0x54   : > { %v662_v27 = vmul.f32 %v661_v14, %v2805_v45  ;;  %v2029_v7 = vsel %vm643_vm2, %v2805_v45, %v624_v55  ;;  %v665_v59 = vmul.f32 %v661_v14, %v647_v49  ;;  %v666_v4 = vmul.f32 %v661_v14, %v1999_v28 }
  0x55   : > { %v667_v36 = vmul.f32 %v661_v14, %v2004_v51  ;;  %v2036_v29 = vsel %vm643_vm2, %v2805_v45, %v625_v8  ;;  %v701_v53 = vrot.slane %v2809_v19, %v2806_v20  ;;  %v721_v31 = vrot.slane %v2810_v44, %v2806_v20 }
  0x56   : > { %v2044_v40 = vrot.slane %v2811_v54, %v2806_v20  ;;  %v668_v62 = vmul.f32 %v661_v14, %v2013_v61  ;;  %v669_v21 = vmul.f32 %v661_v14, %v2018_v52  ;;  %v682_v6 = vmul.f32 %v681_v13, %v2805_v45 }
  0x57   : > { %v2051_v35 = vrot.slane %v2812_v0, %v2806_v20  ;;  %v670_v15 = vadd.f32 %v662_v27, %v587_v33  ;;  %v671_v5 = vadd.f32 %v662_v27, %v588_v47  ;;  %v672_v57 = vadd.f32 %v662_v27, %v589_v34 }
  0x58   : > { %v684_v56 = vmul.f32 %v681_v13, %v647_v49  ;;  %v673_v9 = vadd.f32 %v665_v59, %v590_v63  ;;  %v674_v41 = vadd.f32 %v666_v4, %v591_v37  ;;  %v675_v58 = vadd.f32 %v667_v36, %v592_v26 }
  0x59   : > { %v685_v60 = vmul.f32 %v681_v13, %v1999_v28  ;;  %v686_v55 = vmul.f32 %v681_v13, %v2004_v51  ;;  %v687_v8 = vmul.f32 %v681_v13, %v2013_v61  ;;  %v688_v14 = vmul.f32 %v681_v13, %v2018_v52 }
  0x5a   : > { %v689_v1 = vmul.f32 %v681_v13, %v2023_v25  ;;  %v676_v24 = vadd.f32 %v668_v62, %v593_v30  ;;  %v677_v23 = vadd.f32 %v669_v21, %v594_v2  ;;  %v702_v33 = vmul.f32 %v701_v53, %v2805_v45 }
  0x5b   : > { %v703_v47 = vmul.f32 %v701_v53, %v647_v49  ;;  %v704_v34 = vmul.f32 %v701_v53, %v1999_v28  ;;  %v705_v63 = vmul.f32 %v701_v53, %v2004_v51  ;;  %v706_v37 = vmul.f32 %v701_v53, %v2013_v61 }
  0x5c   : > { %v707_v26 = vmul.f32 %v701_v53, %v2018_v52  ;;  %v690_v27 = vadd.f32 %v682_v6, %v607_v43  ;;  %v691_v59 = vadd.f32 %v682_v6, %v608_v32  ;;  %v692_v4 = vadd.f32 %v684_v56, %v609_v50 }
  0x5d   : > { %v693_v36 = vadd.f32 %v685_v60, %v610_v3  ;;  %v694_v0 = vadd.f32 %v686_v55, %v611_v46  ;;  %v695_v54 = vadd.f32 %v687_v8, %v612_v10  ;;  %v696_v13 = vadd.f32 %v688_v14, %v613_v48 }
  0x5e   : > { %v697_v30 = vadd.f32 %v689_v1, %v614_v38  ;;  %v708_v2 = vmul.f32 %v701_v53, %v2023_v25  ;;  %v709_v62 = vmul.f32 %v701_v53, %v2029_v7  ;;  %v710_v21 = vadd.f32 %v702_v33, %v670_v15 }
  0x5f   : > { %v711_v44 = vadd.f32 %v703_v47, %v671_v5  ;;  %v712_v19 = vadd.f32 %v704_v34, %v672_v57  ;;  %v713_v22 = vadd.f32 %v705_v63, %v673_v9  ;;  %v714_v18 = vadd.f32 %v706_v37, %v674_v41  ;;  %v2813_v37 = vld [vmem:[#allocation22_spill] sm:$0xff] }
  0x60   : > { %v715_v17 = vadd.f32 %v707_v26, %v675_v58  ;;  %v722_v16 = vmul.f32 %v721_v31, %v647_v49  ;;  %v723_v43 = vmul.f32 %v721_v31, %v1999_v28  ;;  %v724_v32 = vmul.f32 %v721_v31, %v2004_v51 }
  0x61   : > { %v725_v50 = vmul.f32 %v721_v31, %v2013_v61  ;;  %v726_v3 = vmul.f32 %v721_v31, %v2018_v52  ;;  %v727_v1 = vmul.f32 %v721_v31, %v2023_v25  ;;  %v728_v46 = vmul.f32 %v721_v31, %v2029_v7 }
  0x62   : > { %v729_v10 = vmul.f32 %v721_v31, %v2036_v29  ;;  %v716_v48 = vadd.f32 %v708_v2, %v676_v24  ;;  %v717_v38 = vadd.f32 %v709_v62, %v677_v23  ;;  %v742_v53 = vmul.f32 %v2044_v40, %v1999_v28 }
  0x63   : > { %v743_v49 = vmul.f32 %v2044_v40, %v2004_v51  ;;  %v744_v6 = vmul.f32 %v2044_v40, %v2013_v61  ;;  %v745_v15 = vmul.f32 %v2044_v40, %v2018_v52  ;;  %v746_v5 = vmul.f32 %v2044_v40, %v2023_v25 }
  0x64   : > { %v747_v31 = vmul.f32 %v2044_v40, %v2029_v7  ;;  %v730_v24 = vadd.f32 %v722_v16, %v690_v27  ;;  %v731_v23 = vadd.f32 %v723_v43, %v691_v59  ;;  %v732_v57 = vadd.f32 %v724_v32, %v692_v4 }
  0x65   : > { %v733_v56 = vadd.f32 %v725_v50, %v693_v36  ;;  %v734_v28 = vadd.f32 %v726_v3, %v694_v0  ;;  %v735_v9 = vadd.f32 %v727_v1, %v695_v54  ;;  %v736_v41 = vadd.f32 %v728_v46, %v696_v13  ;;  %v2814_v36 = vld [vmem:[#allocation21_spill] sm:$0xff] }
  0x66   : > { %v737_v58 = vadd.f32 %v729_v10, %v697_v30  ;;  %v748_v60 = vmul.f32 %v2044_v40, %v2036_v29  ;;  %v749_v55 = vmul.f32 %v2044_v40, %v2805_v45  ;;  %v750_v8 = vadd.f32 %v742_v53, %v710_v21  ;;  %v2815_v53 = vld [vmem:[#allocation12_spill] sm:$0xff] }
  0x67   : > { %v751_v14 = vadd.f32 %v743_v49, %v711_v44  ;;  %v752_v33 = vadd.f32 %v744_v6, %v712_v19  ;;  %v753_v47 = vadd.f32 %v745_v15, %v713_v22  ;;  %v754_v34 = vadd.f32 %v746_v5, %v714_v18  ;;  %v2816_v6 = vld [vmem:[#allocation13_spill] sm:$0xff]  ;;  %v2817_v5 = vld [vmem:[#allocation14_spill] sm:$0xff] }
  0x68   : > { %v755_v63 = vadd.f32 %v747_v31, %v715_v17  ;;  %v762_v16 = vmul.f32 %v2051_v35, %v2004_v51  ;;  %v763_v54 = vmul.f32 %v2051_v35, %v2013_v61  ;;  %v764_v0 = vmul.f32 %v2051_v35, %v2018_v52 }
  0x69   : > { %v781_v26 = vrot.slane %v2813_v37, %v2806_v20  ;;  %v765_v40 = vmul.f32 %v2051_v35, %v2023_v25  ;;  %v766_v22 = vmul.f32 %v2051_v35, %v2029_v7  ;;  %v767_v17 = vmul.f32 %v2051_v35, %v2036_v29 }
  0x6a   : > { %v768_v18 = vmul.f32 %v2051_v35, %v2805_v45  ;;  %v756_v51 = vadd.f32 %v748_v60, %v716_v48  ;;  %v757_v19 = vadd.f32 %v749_v55, %v717_v38  ;;  %v801_v13 = vrot.slane %v2807_v39, %v2814_v36 }
  0x6b   : > { %v782_v44 = vmul.f32 %v781_v26, %v2013_v61  ;;  %v783_v27 = vmul.f32 %v781_v26, %v2018_v52  ;;  %v784_v20 = vmul.f32 %v781_v26, %v2023_v25  ;;  %v785_v59 = vmul.f32 %v781_v26, %v2029_v7 }
  0x6c   : > { %v786_v4 = vmul.f32 %v781_v26, %v2036_v29  ;;  %v770_v30 = vadd.f32 %v762_v16, %v730_v24  ;;  %v771_v2 = vadd.f32 %v763_v54, %v731_v23  ;;  %v772_v62 = vadd.f32 %v764_v0, %v732_v57 }
  0x6d   : > { %v787_v35 = vmul.f32 %v781_v26, %v2805_v45  ;;  %v773_v21 = vadd.f32 %v765_v40, %v733_v56  ;;  %v774_v43 = vadd.f32 %v766_v22, %v734_v28  ;;  %v775_v32 = vadd.f32 %v767_v17, %v735_v9 }
  0x6e   : > { %v776_v61 = vadd.f32 %v768_v18, %v736_v41  ;;  %v777_v50 = vadd.f32 %v768_v18, %v737_v58  ;;  %v790_v52 = vadd.f32 %v782_v44, %v750_v8  ;;  %v802_v3 = vmul.f32 0.0, %v801_v13  ;;  %v2818_v8 = vld [vmem:[#allocation16_spill] sm:$0xff] }
  0x6f   : > { %v821_v25 = vrot.slane %v2808_v42, %v2814_v36  ;;  %v791_v7 = vadd.f32 %v783_v27, %v751_v14  ;;  %v792_v29 = vadd.f32 %v784_v20, %v752_v33  ;;  %v793_v1 = vadd.f32 %v785_v59, %v753_v47  ;;  %v2821_v59 = vld [vmem:[#allocation11_spill] sm:$0xff] }
  0x70   : > { %v794_v46 = vadd.f32 %v786_v4, %v754_v34  ;;  %v795_v39 = vadd.f32 %v787_v35, %v755_v63  ;;  %v796_v10 = vadd.f32 %v787_v35, %v756_v51  ;;  %v805_v48 = vmul.f32 %v801_v13, %v1685_v11  ;;  %v2819_v63 = vld [vmem:[#allocation6_spill] sm:$0xff] }
  0x71   : > { %v806_v45 = vmul.f32 %v801_v13, %v1688_v12  ;;  %v797_v38 = vadd.f32 %v787_v35, %v757_v19  ;;  %v807_v49 = vmul.f32 %v801_v13, %v2815_v53  ;;  %v808_v15 = vmul.f32 %v801_v13, %v2816_v6  ;;  %v2820_v51 = vld [vmem:[#allocation10_spill] sm:$0xff] }
  0x72   : > { %v809_v31 = vmul.f32 %v801_v13, %v2817_v5  ;;  %v810_v24 = vadd.f32 %v802_v3, %v770_v30  ;;  %v822_v23 = vmul.f32 0.0, %v821_v25  ;;  %v824_v42 = vmul.f32 %v821_v25, %v1685_v11 }
  0x73   : > { %v825_v57 = vmul.f32 %v821_v25, %v1688_v12  ;;  %v811_v56 = vadd.f32 %v802_v3, %v771_v2  ;;  %v826_v28 = vmul.f32 %v821_v25, %v2815_v53  ;;  %v827_v9 = vmul.f32 %v821_v25, %v2816_v6 }
  0x74   : > { %v828_v41 = vmul.f32 %v821_v25, %v2817_v5  ;;  %v812_v58 = vadd.f32 %v802_v3, %v772_v62  ;;  %v813_v60 = vadd.f32 %v805_v48, %v773_v21  ;;  %v814_v55 = vadd.f32 %v806_v45, %v774_v43  ;;  %v2822_v62 = vld [vmem:[#allocation19_spill] sm:$0xff] }
  0x75   : > { %v829_v14 = vmul.f32 %v821_v25, %v2818_v8  ;;  %v815_v33 = vadd.f32 %v807_v49, %v775_v32  ;;  %v816_v47 = vadd.f32 %v808_v15, %v776_v61  ;;  %v817_v34 = vadd.f32 %v809_v31, %v777_v50  ;;  %v2823_v50 = vld [vmem:[#allocation17_spill] sm:$0xff]  ;;  %v2824_v31 = vld [vmem:[#allocation18_spill] sm:$0xff] }
  0x76   : > { %v841_v16 = vrot.slane %v2819_v63, %v2814_v36  ;;  %v830_v54 = vadd.f32 %v822_v23, %v790_v52  ;;  %v831_v0 = vadd.f32 %v822_v23, %v791_v7  ;;  %v832_v26 = vadd.f32 %v824_v42, %v792_v29 }
  0x77   : > { %v833_v40 = vadd.f32 %v825_v57, %v793_v1  ;;  %v834_v22 = vadd.f32 %v826_v28, %v794_v46  ;;  %v835_v17 = vadd.f32 %v827_v9, %v795_v39  ;;  %v836_v18 = vadd.f32 %v828_v41, %v796_v10 }
  0x78   : > { %v861_v19 = vrot.slane %v2820_v51, %v2814_v36  ;;  %v837_v44 = vadd.f32 %v829_v14, %v797_v38  ;;  %v842_v27 = vmul.f32 0.0, %v841_v16  ;;  %v843_v20 = vmul.f32 %v841_v16, %v1685_v11 }
  0x79   : > { %v881_v4 = vrot.slane %v2821_v59, %v2814_v36  ;;  %v844_v13 = vmul.f32 %v841_v16, %v1688_v12  ;;  %v845_v30 = vmul.f32 %v841_v16, %v2815_v53  ;;  %v846_v2 = vmul.f32 %v841_v16, %v2816_v6 }
  0x7a   : > { %v901_v35 = vrot.slane %v2822_v62, %v2814_v36  ;;  %v847_v21 = vmul.f32 %v841_v16, %v2817_v5  ;;  %v848_v43 = vmul.f32 %v841_v16, %v2818_v8  ;;  %v921_v32 = vrot.slane %v2813_v37, %v2814_v36 }
  0x7b   : > { %v941_v61 = vrot.slane %v1685_v11, 1  ;;  %v849_v52 = vmul.f32 %v841_v16, %v2823_v50  ;;  %v862_v3 = vmul.f32 %v861_v19, %v1685_v11  ;;  %v863_v25 = vmul.f32 %v861_v19, %v1688_v12 }
  0x7c   : > { %v864_v7 = vmul.f32 %v861_v19, %v2815_v53  ;;  %v850_v29 = vadd.f32 %v842_v27, %v810_v24  ;;  %v851_v1 = vadd.f32 %v843_v20, %v811_v56  ;;  %v865_v46 = vmul.f32 %v861_v19, %v2816_v6 }
  0x7d   : > { %v866_v39 = vmul.f32 %v861_v19, %v2817_v5  ;;  %v852_v10 = vadd.f32 %v844_v13, %v812_v58  ;;  %v853_v48 = vadd.f32 %v845_v30, %v813_v60  ;;  %v854_v45 = vadd.f32 %v846_v2, %v814_v55 }
  0x7e   : > { %v867_v36 = vmul.f32 %v861_v19, %v2818_v8  ;;  %v855_v38 = vadd.f32 %v847_v21, %v815_v33  ;;  %v856_v49 = vadd.f32 %v848_v43, %v816_v47  ;;  %v868_v15 = vmul.f32 %v861_v19, %v2823_v50 }
  0x7f   : > { %v869_v23 = vmul.f32 %v861_v19, %v2824_v31  ;;  %v857_v42 = vadd.f32 %v849_v52, %v817_v34  ;;  %v870_v57 = vadd.f32 %v862_v3, %v830_v54  ;;  %v871_v28 = vadd.f32 %v863_v25, %v831_v0 }
  0x80   : > { %v872_v24 = vadd.f32 %v864_v7, %v832_v26  ;;  %v873_v56 = vadd.f32 %v865_v46, %v833_v40  ;;  %v874_v9 = vadd.f32 %v866_v39, %v834_v22  ;;  %v882_v41 = vmul.f32 %v881_v4, %v1688_v12  ;;  %v2825_v22 = vld [vmem:[#allocation3_spill] sm:$0xff] }
  0x81   : > { %v883_v58 = vmul.f32 %v881_v4, %v2815_v53  ;;  %v875_v60 = vadd.f32 %v867_v36, %v835_v17  ;;  %v884_v55 = vmul.f32 %v881_v4, %v2816_v6  ;;  %v885_v14 = vmul.f32 %v881_v4, %v2817_v5 }
  0x82   : > { %v886_v33 = vmul.f32 %v881_v4, %v2818_v8  ;;  %v876_v47 = vadd.f32 %v868_v15, %v836_v18  ;;  %v877_v63 = vadd.f32 %v869_v23, %v837_v44  ;;  %v887_v34 = vmul.f32 %v881_v4, %v2823_v50 }
  0x83   : > { %v888_v16 = vmul.f32 %v881_v4, %v2824_v31  ;;  %v889_v54 = vmul.f32 0.0, %v881_v4  ;;  %v902_v0 = vmul.f32 %v901_v35, %v2815_v53  ;;  %v903_v26 = vmul.f32 %v901_v35, %v2816_v6 }
  0x84   : > { %v904_v40 = vmul.f32 %v901_v35, %v2817_v5  ;;  %vm966_vm3 = vcmp.lt.s32.totalorder %v2825_v22, 7  ;;  %v890_v17 = vadd.f32 %v882_v41, %v850_v29  ;;  %v891_v51 = vadd.f32 %v883_v58, %v851_v1 }
  0x85   : > { %v905_v19 = vmul.f32 %v901_v35, %v2818_v8  ;;  %v906_v18 = vmul.f32 %v901_v35, %v2823_v50  ;;  %v892_v44 = vadd.f32 %v884_v55, %v852_v10  ;;  %v893_v27 = vadd.f32 %v885_v14, %v853_v48  ;;  %v2255_v55 = vld [vmem:[%s2722_s1] sm:$0x7f] }
  0x86   : > { %v894_v20 = vadd.f32 %v886_v33, %v854_v45  ;;  %v907_v59 = vmul.f32 %v901_v35, %v2824_v31  ;;  %v895_v4 = vadd.f32 %v887_v34, %v855_v38  ;;  %v896_v13 = vadd.f32 %v888_v16, %v856_v49  ;;  %2827 = vst [vmem:[#allocation7_spill] sm:$0xff] %v2255_v55  ;;  %v2268_v16 = vld [vmem:[%s1654_s19 + $0x1] sm:$0xff] }
  0x87   : > { %v908_v30 = vmul.f32 0.0, %v901_v35  ;;  %v922_v2 = vmul.f32 %v921_v32, %v2816_v6  ;;  %v897_v62 = vadd.f32 %v889_v54, %v857_v42  ;;  %v2166_v21 = vadd.f32 %v902_v0, %v870_v57  ;;  %v2272_v0 = vld [vmem:[%s1654_s19 + $0x9] sm:$0xff] }
  0x88   : > { %v2168_v43 = vadd.f32 %v903_v26, %v871_v28  ;;  %v2170_v52 = vadd.f32 %v904_v40, %v872_v24  ;;  %v2172_v3 = vadd.f32 %v905_v19, %v873_v56  ;;  %v2174_v25 = vadd.f32 %v906_v18, %v874_v9  ;;  %v2276_v40 = vld [vmem:[%s1654_s19 + $0x11] sm:$0xff]  ;;  %v2281_v19 = vld [vmem:[%s1654_s19 + $0x19] sm:$0xff] }
  0x89   : > { %v923_v7 = vmul.f32 %v921_v32, %v2817_v5  ;;  %v924_v29 = vmul.f32 %v921_v32, %v2818_v8  ;;  %v2178_v1 = vadd.f32 %v907_v59, %v875_v60  ;;  %v925_v35 = vmul.f32 %v921_v32, %v2823_v50  ;;  %2830 = vst [vmem:[#allocation8_spill] sm:$0xff] %v2281_v19 }
  0x8a   : > { %v926_v46 = vmul.f32 %v921_v32, %v2824_v31  ;;  %v927_v39 = vmul.f32 0.0, %v921_v32  ;;  %v2182_v10 = vadd.f32 %v908_v30, %v876_v47  ;;  %v2184_v48 = vadd.f32 %v908_v30, %v877_v63  ;;  %v2264_v63 = vld [vmem:[%s2722_s1 + $0x8] sm:$0x7f]  ;;  %v2297_v30 = vld [vmem:[%s2722_s1 + $0x10] sm:$0x7f] }
  0x8b   : > { %v2186_v45 = vadd.f32 %v922_v2, %v890_v17  ;;  %v942_v36 = vrot.slane %v1688_v12, 1  ;;  %v943_v38 = vrot.slane %v2815_v53, 1  ;;  %v944_v49 = vrot.slane %v2816_v6, 1  ;;  %2829 = vst [vmem:[#allocation15_spill] sm:$0xff] %v2264_v63  ;;  %2833 = vst [vmem:[#allocation5_spill] sm:$0xff] %v2297_v30 }
  0x8c   : > { %v945_v15 = vrot.slane %v2817_v5, 1  ;;  %v946_v23 = vrot.slane %v2818_v8, 1  ;;  %v2193_v42 = vadd.f32 %v923_v7, %v891_v51  ;;  %v2195_v57 = vadd.f32 %v924_v29, %v892_v44  ;;  %v2826_v5 = vld [vmem:[#allocation9_spill] sm:$0xff]  ;;  %v2285_v44 = vld [vmem:[%s1654_s19 + $0x21] sm:$0xff] }
  0x8d   : > { %v947_v32 = vrot.slane %v2823_v50, 1  ;;  %v948_v28 = vrot.slane %v2824_v31, 1  ;;  %v2199_v24 = vadd.f32 %v925_v35, %v893_v27  ;;  %v2201_v56 = vadd.f32 %v926_v46, %v894_v20  ;;  %2831 = vst [vmem:[#allocation20_spill] sm:$0xff] %v2285_v44  ;;  %v2289_v20 = vld [vmem:[%s1654_s19 + $0x29] sm:$0xff]  ;;  %v2311_v46 = vld [vmem:[%s2722_s1 + $0x20] sm:$0x7f] }
  0x8e   : > { %v2203_v12 = vadd.f32 %v927_v39, %v895_v4  ;;  %v2205_v53 = vadd.f32 %v927_v39, %v896_v13  ;;  %v2207_v6 = vadd.f32 %v927_v39, %v897_v62  ;;  %v2214_v8 = vsel %vm966_vm3, %v941_v61, %v2826_v5  ;;  %2832 = vst [vmem:[#allocation4_spill] sm:$0xff] %v2289_v20  ;;  %v2303_v62 = vld [vmem:[%s2722_s1 + $0x18] sm:$0x7f] }
  0x8f   : > { %v2219_v50 = vsel %vm966_vm3, %v942_v36, %v2826_v5  ;;  %v983_v31 = vsub.s32 4, %v2825_v22  ;;  %v2225_v9 = vsel %vm966_vm3, %v943_v38, %v2826_v5  ;;  %v2230_v11 = vsel %vm966_vm3, %v944_v49, %v2826_v5  ;;  %2834 = vst [vmem:[#allocation22_spill] sm:$0xff] %v2303_v62  ;;  %2835 = vst [vmem:[#allocation21_spill] sm:$0xff] %v2311_v46  ;;  %v2319_v36 = vld [vmem:[%s2722_s1 + $0x28] sm:$0x7f] }
  0x90   : > { %v2235_v61 = vsel %vm966_vm3, %v945_v15, %v2826_v5  ;;  %v2240_v41 = vsel %vm966_vm3, %v946_v23, %v2826_v5  ;;  %v2245_v58 = vsel %vm966_vm3, %v947_v32, %v2826_v5  ;;  %v2250_v60 = vsel %vm966_vm3, %v948_v28, %v2826_v5  ;;  %2836 = vst [vmem:[#allocation12_spill] sm:$0xff] %v2319_v36  ;;  %v2330_v32 = vld [vmem:[%s1654_s19 + $0x31] sm:$0xff] }
  0x91   : > { %v984_v14 = vrot.slane %v2255_v55, %v983_v31  ;;  %v2828_v33 = vmov 0.0   ;;  %v1004_v34 = vrot.slane %v2264_v63, %v983_v31  ;;  %v1024_v2 = vrot.slane %v2297_v30, %v983_v31  ;;  %2837 = vst [vmem:[#allocation13_spill] sm:$0xff] %v2330_v32 }
  0x92   : > { %v2259_v47 = vrot.slane %v2828_v33, 2  ;;  %v1044_v7 = vrot.slane %v2303_v62, %v983_v31  ;;  %v2314_v39 = vrot.slane %v2311_v46, %v983_v31  ;;  %v2322_v38 = vrot.slane %v2319_v36, %v983_v31 }
  0x93   : > { %v985_v51 = vmul.f32 %v984_v14, %v2826_v5  ;;  %v988_v4 = vmul.f32 %v984_v14, %v2214_v8  ;;  %v989_v13 = vmul.f32 %v984_v14, %v2219_v50  ;;  %v990_v29 = vmul.f32 %v984_v14, %v2225_v9 }
  0x94   : > { %v991_v35 = vmul.f32 %v984_v14, %v2230_v11  ;;  %v992_v49 = vmul.f32 %v984_v14, %v2235_v61  ;;  %v1005_v15 = vmul.f32 %v1004_v34, %v2826_v5  ;;  %v2327_v23 = vrot.slane %v2813_v37, %v983_v31 }
  0x95   : > { %v993_v59 = vadd.f32 %v985_v51, %v2166_v21  ;;  %v994_v27 = vadd.f32 %v985_v51, %v2168_v43  ;;  %v995_v18 = vadd.f32 %v985_v51, %v2170_v52  ;;  %v1007_v17 = vmul.f32 %v1004_v34, %v2214_v8 }
  0x96   : > { %v996_v26 = vadd.f32 %v988_v4, %v2172_v3  ;;  %v997_v14 = vadd.f32 %v989_v13, %v2174_v25  ;;  %v1008_v54 = vmul.f32 %v1004_v34, %v2219_v50  ;;  %v1009_v37 = vmul.f32 %v1004_v34, %v2225_v9 }
  0x97   : > { %v998_v31 = vadd.f32 %v990_v29, %v2178_v1  ;;  %v999_v28 = vadd.f32 %v991_v35, %v2182_v10  ;;  %v1010_v21 = vmul.f32 %v1004_v34, %v2230_v11  ;;  %v1011_v43 = vmul.f32 %v1004_v34, %v2235_v61 }
  0x98   : > { %v1000_v52 = vadd.f32 %v992_v49, %v2184_v48  ;;  %v1012_v51 = vmul.f32 %v1004_v34, %v2240_v41  ;;  %v1025_v3 = vmul.f32 %v1024_v2, %v2826_v5  ;;  %v1026_v25 = vmul.f32 %v1024_v2, %v2214_v8 }
  0x99   : > { %v1013_v4 = vadd.f32 %v1005_v15, %v2186_v45  ;;  %v1027_v13 = vmul.f32 %v1024_v2, %v2219_v50  ;;  %v1028_v1 = vmul.f32 %v1024_v2, %v2225_v9  ;;  %v1029_v10 = vmul.f32 %v1024_v2, %v2230_v11 }
  0x9a   : > { %v1014_v29 = vadd.f32 %v1005_v15, %v2193_v42  ;;  %v1015_v35 = vadd.f32 %v1007_v17, %v2195_v57  ;;  %v1016_v48 = vadd.f32 %v1008_v54, %v2199_v24  ;;  %v1017_v34 = vadd.f32 %v1009_v37, %v2201_v56 }
  0x9b   : > { %v1018_v49 = vadd.f32 %v1010_v21, %v2203_v12  ;;  %v1019_v36 = vadd.f32 %v1011_v43, %v2205_v53  ;;  %v1030_v45 = vmul.f32 %v1024_v2, %v2235_v61  ;;  %v1031_v46 = vmul.f32 %v1024_v2, %v2240_v41 }
  0x9c   : > { %v1020_v62 = vadd.f32 %v1012_v51, %v2207_v6  ;;  %v1032_v30 = vmul.f32 %v1024_v2, %v2245_v58  ;;  %v1033_v63 = vadd.f32 %v1025_v3, %v993_v59  ;;  %v1034_v42 = vadd.f32 %v1026_v25, %v994_v27 }
  0x9d   : > { %v1035_v15 = vadd.f32 %v1027_v13, %v995_v18  ;;  %v1036_v57 = vadd.f32 %v1028_v1, %v996_v26  ;;  %v1037_v17 = vadd.f32 %v1029_v10, %v997_v14  ;;  %v1045_v24 = vmul.f32 %v1044_v7, %v2214_v8 }
  0x9e   : > { %v1046_v56 = vmul.f32 %v1044_v7, %v2219_v50  ;;  %v1047_v12 = vmul.f32 %v1044_v7, %v2225_v9  ;;  %v1048_v53 = vmul.f32 %v1044_v7, %v2230_v11  ;;  %v1049_v54 = vmul.f32 %v1044_v7, %v2235_v61 }
  0x9f   : > { %v1038_v37 = vadd.f32 %v1030_v45, %v998_v31  ;;  %v1039_v21 = vadd.f32 %v1031_v46, %v999_v28  ;;  %v1050_v6 = vmul.f32 %v1044_v7, %v2240_v41  ;;  %v1051_v59 = vmul.f32 %v1044_v7, %v2245_v58 }
  0xa0   : > { %v1040_v27 = vadd.f32 %v1032_v30, %v1000_v52  ;;  %v1052_v26 = vmul.f32 %v1044_v7, %v2250_v60  ;;  %v1065_v8 = vmul.f32 %v2314_v39, %v2219_v50  ;;  %v1066_v18 = vmul.f32 %v2314_v39, %v2225_v9 }
  0xa1   : > { %v1053_v2 = vadd.f32 %v1045_v24, %v1013_v4  ;;  %v1067_v14 = vmul.f32 %v2314_v39, %v2230_v11  ;;  %v1068_v46 = vmul.f32 %v2314_v39, %v2235_v61  ;;  %v1069_v28 = vmul.f32 %v2314_v39, %v2240_v41 }
  0xa2   : > { %v1054_v31 = vadd.f32 %v1046_v56, %v1014_v29  ;;  %v1055_v30 = vadd.f32 %v1047_v12, %v1015_v35  ;;  %v1056_v43 = vadd.f32 %v1048_v53, %v1016_v48  ;;  %v1057_v7 = vadd.f32 %v1049_v54, %v1017_v34 }
  0xa3   : > { %v1058_v52 = vadd.f32 %v1050_v6, %v1018_v49  ;;  %v1059_v51 = vadd.f32 %v1051_v59, %v1019_v36  ;;  %v1070_v50 = vmul.f32 %v2314_v39, %v2245_v58  ;;  %v1071_v3 = vmul.f32 %v2314_v39, %v2250_v60 }
  0xa4   : > { %v1060_v25 = vadd.f32 %v1052_v26, %v1020_v62  ;;  %v1072_v4 = vmul.f32 %v2314_v39, %v2826_v5  ;;  %v1073_v13 = vadd.f32 %v1065_v8, %v1033_v63  ;;  %v1074_v1 = vadd.f32 %v1066_v18, %v1034_v42  ;;  %v2415_v26 = vld [vmem:[%s1654_s19 + $0x39] sm:$0xff] }
  0xa5   : > { %v1075_v10 = vadd.f32 %v1067_v14, %v1035_v15  ;;  %v1076_v45 = vadd.f32 %v1068_v46, %v1036_v57  ;;  %v1077_v29 = vadd.f32 %v1069_v28, %v1037_v17  ;;  %v1085_v35 = vmul.f32 %v2322_v38, %v2225_v9 }
  0xa6   : > { %v1086_v36 = vmul.f32 %v2322_v38, %v2230_v11  ;;  %v1087_v48 = vmul.f32 %v2322_v38, %v2235_v61  ;;  %v1088_v62 = vmul.f32 %v2322_v38, %v2240_v41  ;;  %v1089_v39 = vmul.f32 %v2322_v38, %v2245_v58 }
  0xa7   : > { %v1078_v63 = vadd.f32 %v1070_v50, %v1038_v37  ;;  %v1079_v34 = vadd.f32 %v1071_v3, %v1039_v21  ;;  %v1090_v49 = vmul.f32 %v2322_v38, %v2250_v60  ;;  %v1091_v9 = vmul.f32 %v2322_v38, %v2826_v5 }
  0xa8   : > { %v1080_v42 = vadd.f32 %v1072_v4, %v1040_v27  ;;  %v1105_v15 = vmul.f32 %v2327_v23, %v2230_v11  ;;  %v1106_v57 = vmul.f32 %v2327_v23, %v2235_v61  ;;  %v1107_v17 = vmul.f32 %v2327_v23, %v2240_v41 }
  0xa9   : > { %v1093_v24 = vadd.f32 %v1085_v35, %v1053_v2  ;;  %v1108_v56 = vmul.f32 %v2327_v23, %v2245_v58  ;;  %v1109_v12 = vmul.f32 %v2327_v23, %v2250_v60  ;;  %v1110_v38 = vmul.f32 %v2327_v23, %v2826_v5 }
  0xaa   : > { %v1094_v53 = vadd.f32 %v1086_v36, %v1054_v31  ;;  %v1095_v54 = vadd.f32 %v1087_v48, %v1055_v30  ;;  %v1096_v11 = vadd.f32 %v1088_v62, %v1056_v43  ;;  %v1097_v37 = vadd.f32 %v1089_v39, %v1057_v7 }
  0xab   : > { %v1098_v21 = vadd.f32 %v1090_v49, %v1058_v52  ;;  %v1099_v61 = vadd.f32 %v1091_v9, %v1059_v51  ;;  %v1100_v6 = vadd.f32 %v1091_v9, %v1060_v25  ;;  %vm1149_vm4 = vcmp.lt.s32.totalorder %v2825_v22, 6 }
  0xac   : > { %v1113_v41 = vadd.f32 %v1105_v15, %v1073_v13  ;;  %v1114_v59 = vadd.f32 %v1106_v57, %v1074_v1  ;;  %v1115_v27 = vadd.f32 %v1107_v17, %v1075_v10  ;;  %v1131_v58 = vrot.slane %v2415_v26, 2  ;;  %v2847_v57 = vld [vmem:[#allocation22_spill] sm:$0xff] }
  0xad   : > { %v1116_v60 = vadd.f32 %v1108_v56, %v1076_v45  ;;  %v1117_v8 = vadd.f32 %v1109_v12, %v1077_v29  ;;  %v1118_v18 = vadd.f32 %v1110_v38, %v1078_v63  ;;  %v1119_v5 = vadd.f32 %v1110_v38, %v1079_v34  ;;  %v2845_v29 = vld [vmem:[#allocation15_spill] sm:$0xff] }
  0xae   : > { %v1120_v23 = vadd.f32 %v1110_v38, %v1080_v42  ;;  %v2838_v2 = vrot.slane %v2268_v16, 2  ;;  %v2839_v46 = vrot.slane %v2272_v0, 2  ;;  %v1166_v31 = vsub.s32 5, %v2825_v22  ;;  %v2846_v42 = vld [vmem:[#allocation5_spill] sm:$0xff] }
  0xaf   : > { %v2840_v30 = vrot.slane %v2276_v40, 2  ;;  %v2841_v7 = vrot.slane %v2281_v19, 2  ;;  %v2842_v51 = vrot.slane %v2285_v44, 2  ;;  %v2843_v3 = vrot.slane %v2289_v20, 2  ;;  %v2848_v38 = vld [vmem:[#allocation21_spill] sm:$0xff] }
  0xb0   : > { %v2423_v14 = vsel %vm1149_vm4, %v2838_v2, %v2259_v47  ;;  %v2430_v28 = vsel %vm1149_vm4, %v2839_v46, %v2259_v47  ;;  %v2844_v4 = vrot.slane %v2330_v32, 2  ;;  %v2471_v1 = vsel %vm1149_vm4, %v1131_v58, %v2259_v47  ;;  %v2849_v2 = vld [vmem:[#allocation12_spill] sm:$0xff] }
  0xb1   : > { %v2438_v43 = vsel %vm1149_vm4, %v2840_v30, %v2259_v47  ;;  %v2445_v52 = vsel %vm1149_vm4, %v2841_v7, %v2259_v47  ;;  %v2452_v50 = vsel %vm1149_vm4, %v2842_v51, %v2259_v47  ;;  %v2459_v25 = vsel %vm1149_vm4, %v2843_v3, %v2259_v47  ;;  %v2502_v51 = vld [vmem:[%s2722_s1 + $0x30] sm:$0x7f] }
  0xb2   : > { %v2466_v13 = vsel %vm1149_vm4, %v2844_v4, %v2259_v47  ;;  %v1167_v10 = vrot.slane %v2255_v55, %v1166_v31  ;;  %v2475_v45 = vrot.slane %v2828_v33, 3  ;;  %v1187_v35 = vrot.slane %v2845_v29, %v1166_v31  ;;  %2850 = vst [vmem:[#allocation14_spill] sm:$0xff] %v2502_v51 }
  0xb3   : > { %v1207_v15 = vrot.slane %v2846_v42, %v1166_v31  ;;  %v1227_v17 = vrot.slane %v2847_v57, %v1166_v31  ;;  %v2492_v58 = vrot.slane %v2848_v38, %v1166_v31  ;;  %v2495_v46 = vrot.slane %v2849_v2, %v1166_v31 }
  0xb4   : > { %v1168_v39 = vmul.f32 %v1167_v10, %v2259_v47  ;;  %v1171_v9 = vmul.f32 %v1167_v10, %v2423_v14  ;;  %v1172_v33 = vmul.f32 %v1167_v10, %v2430_v28  ;;  %v1173_v56 = vmul.f32 %v1167_v10, %v2438_v43 }
  0xb5   : > { %v1174_v12 = vmul.f32 %v1167_v10, %v2445_v52  ;;  %v1175_v30 = vmul.f32 %v1167_v10, %v2452_v50  ;;  %v1188_v7 = vmul.f32 %v1187_v35, %v2259_v47  ;;  %v2505_v3 = vrot.slane %v2502_v51, %v1166_v31 }
  0xb6   : > { %v1176_v49 = vadd.f32 %v1168_v39, %v1093_v24  ;;  %v1177_v34 = vadd.f32 %v1168_v39, %v1094_v53  ;;  %v1178_v63 = vadd.f32 %v1168_v39, %v1095_v54  ;;  %v1190_v62 = vmul.f32 %v1187_v35, %v2423_v14 }
  0xb7   : > { %v1179_v48 = vadd.f32 %v1171_v9, %v1096_v11  ;;  %v1180_v36 = vadd.f32 %v1172_v33, %v1097_v37  ;;  %v1191_v10 = vmul.f32 %v1187_v35, %v2430_v28  ;;  %v1192_v2 = vmul.f32 %v1187_v35, %v2438_v43 }
  0xb8   : > { %v1181_v38 = vadd.f32 %v1173_v56, %v1098_v21  ;;  %v1182_v57 = vadd.f32 %v1174_v12, %v1099_v61  ;;  %v1193_v42 = vmul.f32 %v1187_v35, %v2445_v52  ;;  %v1194_v31 = vmul.f32 %v1187_v35, %v2452_v50 }
  0xb9   : > { %v1183_v51 = vadd.f32 %v1175_v30, %v1100_v6  ;;  %v1195_v4 = vmul.f32 %v1187_v35, %v2459_v25  ;;  %v1208_v24 = vmul.f32 %v1207_v15, %v2259_v47  ;;  %v1209_v53 = vmul.f32 %v1207_v15, %v2423_v14 }
  0xba   : > { %v1196_v54 = vadd.f32 %v1188_v7, %v1113_v41  ;;  %v1210_v11 = vmul.f32 %v1207_v15, %v2430_v28  ;;  %v1211_v37 = vmul.f32 %v1207_v15, %v2438_v43  ;;  %v1212_v39 = vmul.f32 %v1207_v15, %v2445_v52 }
  0xbb   : > { %v1197_v21 = vadd.f32 %v1188_v7, %v1114_v59  ;;  %v1198_v61 = vadd.f32 %v1190_v62, %v1115_v27  ;;  %v1199_v9 = vadd.f32 %v1191_v10, %v1116_v60  ;;  %v1200_v33 = vadd.f32 %v1192_v2, %v1117_v8 }
  0xbc   : > { %v1201_v56 = vadd.f32 %v1193_v42, %v1118_v18  ;;  %v1202_v12 = vadd.f32 %v1194_v31, %v1119_v5  ;;  %v1213_v6 = vmul.f32 %v1207_v15, %v2452_v50  ;;  %v1214_v35 = vmul.f32 %v1207_v15, %v2459_v25 }
  0xbd   : > { %v1203_v30 = vadd.f32 %v1195_v4, %v1120_v23  ;;  %v1215_v29 = vmul.f32 %v1207_v15, %v2466_v13  ;;  %v1216_v41 = vadd.f32 %v1208_v24, %v1176_v49  ;;  %v1217_v55 = vadd.f32 %v1209_v53, %v1177_v34 }
  0xbe   : > { %v1218_v32 = vadd.f32 %v1210_v11, %v1178_v63  ;;  %v1219_v20 = vadd.f32 %v1211_v37, %v1179_v48  ;;  %v1220_v44 = vadd.f32 %v1212_v39, %v1180_v36  ;;  %v1228_v19 = vmul.f32 %v1227_v17, %v2423_v14 }
  0xbf   : > { %v1229_v59 = vmul.f32 %v1227_v17, %v2430_v28  ;;  %v1230_v27 = vmul.f32 %v1227_v17, %v2438_v43  ;;  %v1231_v60 = vmul.f32 %v1227_v17, %v2445_v52  ;;  %v1232_v8 = vmul.f32 %v1227_v17, %v2452_v50 }
  0xc0   : > { %v1221_v18 = vadd.f32 %v1213_v6, %v1181_v38  ;;  %v1222_v5 = vadd.f32 %v1214_v35, %v1182_v57  ;;  %v1233_v23 = vmul.f32 %v1227_v17, %v2459_v25  ;;  %v1234_v62 = vmul.f32 %v1227_v17, %v2466_v13 }
  0xc1   : > { %v1223_v34 = vadd.f32 %v1215_v29, %v1183_v51  ;;  %v1235_v48 = vmul.f32 %v1227_v17, %v2471_v1  ;;  %v1248_v14 = vmul.f32 %v2492_v58, %v2430_v28  ;;  %v1249_v36 = vmul.f32 %v2492_v58, %v2438_v43 }
  0xc2   : > { %v1236_v63 = vadd.f32 %v1228_v19, %v1196_v54  ;;  %v1250_v49 = vmul.f32 %v2492_v58, %v2445_v52  ;;  %v1251_v42 = vmul.f32 %v2492_v58, %v2452_v50  ;;  %v1252_v15 = vmul.f32 %v2492_v58, %v2459_v25 }
  0xc3   : > { %v1237_v57 = vadd.f32 %v1229_v59, %v1197_v21  ;;  %v1238_v29 = vadd.f32 %v1230_v27, %v1198_v61  ;;  %v1239_v38 = vadd.f32 %v1231_v60, %v1199_v9  ;;  %v1240_v17 = vadd.f32 %v1232_v8, %v1200_v33 }
  0xc4   : > { %v1241_v2 = vadd.f32 %v1233_v23, %v1201_v56  ;;  %v1242_v7 = vadd.f32 %v1234_v62, %v1202_v12  ;;  %v1253_v28 = vmul.f32 %v2492_v58, %v2466_v13  ;;  %v1254_v19 = vmul.f32 %v2492_v58, %v2471_v1 }
  0xc5   : > { %v1243_v51 = vadd.f32 %v1235_v48, %v1203_v30  ;;  %v1255_v4 = vmul.f32 %v2492_v58, %v2259_v47  ;;  %v1256_v10 = vadd.f32 %v1248_v14, %v1216_v41  ;;  %v1257_v31 = vadd.f32 %v1249_v36, %v1217_v55 }
  0xc6   : > { %v1258_v24 = vadd.f32 %v1250_v49, %v1218_v32  ;;  %v1259_v53 = vadd.f32 %v1251_v42, %v1219_v20  ;;  %v1260_v54 = vadd.f32 %v1252_v15, %v1220_v44  ;;  %v1268_v11 = vmul.f32 %v2495_v46, %v2438_v43 }
  0xc7   : > { %v1269_v37 = vmul.f32 %v2495_v46, %v2445_v52  ;;  %v1270_v39 = vmul.f32 %v2495_v46, %v2452_v50  ;;  %v1271_v21 = vmul.f32 %v2495_v46, %v2459_v25  ;;  %v1272_v58 = vmul.f32 %v2495_v46, %v2466_v13 }
  0xc8   : > { %v1261_v61 = vadd.f32 %v1253_v28, %v1221_v18  ;;  %v1262_v55 = vadd.f32 %v1254_v19, %v1222_v5  ;;  %v1273_v44 = vmul.f32 %v2495_v46, %v2471_v1  ;;  %v1274_v20 = vmul.f32 %v2495_v46, %v2259_v47  ;;  %v2862_v28 = vld [vmem:[#allocation7_spill] sm:$0xff] }
  0xc9   : > { %v1263_v32 = vadd.f32 %v1255_v4, %v1223_v34  ;;  %v1288_v43 = vmul.f32 %v2505_v3, %v2445_v52  ;;  %v1289_v9 = vmul.f32 %v2505_v3, %v2452_v50  ;;  %v1290_v33 = vmul.f32 %v2505_v3, %v2459_v25 }
  0xca   : > { %v1276_v56 = vadd.f32 %v1268_v11, %v1236_v63  ;;  %v1291_v12 = vmul.f32 %v2505_v3, %v2466_v13  ;;  %v1292_v6 = vmul.f32 %v2505_v3, %v2471_v1  ;;  %v1293_v46 = vmul.f32 %v2505_v3, %v2259_v47 }
  0xcb   : > { %v1277_v35 = vadd.f32 %v1269_v37, %v1237_v57  ;;  %v1278_v30 = vadd.f32 %v1270_v39, %v1238_v29  ;;  %v1279_v41 = vadd.f32 %v1271_v21, %v1239_v38  ;;  %v1280_v52 = vadd.f32 %v1272_v58, %v1240_v17  ;;  %v2860_v38 = vld [vmem:[#allocation13_spill] sm:$0xff]  ;;  %v2867_v37 = vld [vmem:[#allocation12_spill] sm:$0xff] }
  0xcc   : > { %v1281_v59 = vadd.f32 %v1273_v44, %v1241_v2  ;;  %v1282_v27 = vadd.f32 %v1274_v20, %v1242_v7  ;;  %v1283_v50 = vadd.f32 %v1274_v20, %v1243_v51  ;;  %vm1332_vm5 = vcmp.lt.s32.totalorder %v2825_v22, 5  ;;  %v2863_v51 = vld [vmem:[#allocation15_spill] sm:$0xff] }
  0xcd   : > { %v1296_v25 = vadd.f32 %v1288_v43, %v1256_v10  ;;  %v1297_v60 = vadd.f32 %v1289_v9, %v1257_v31  ;;  %v1298_v8 = vadd.f32 %v1290_v33, %v1258_v24  ;;  %v1314_v13 = vrot.slane %v2415_v26, 3  ;;  %v2864_v10 = vld [vmem:[#allocation5_spill] sm:$0xff]  ;;  %v2865_v24 = vld [vmem:[#allocation22_spill] sm:$0xff] }
  0xce   : > { %v1299_v18 = vadd.f32 %v1291_v12, %v1259_v53  ;;  %v1300_v5 = vadd.f32 %v1292_v6, %v1260_v54  ;;  %v1301_v1 = vadd.f32 %v1293_v46, %v1261_v61  ;;  %v1302_v23 = vadd.f32 %v1293_v46, %v1262_v55  ;;  %v2866_v54 = vld [vmem:[#allocation21_spill] sm:$0xff] }
  0xcf   : > { %v1303_v62 = vadd.f32 %v1293_v46, %v1263_v32  ;;  %v2851_v47 = vrot.slane %v2268_v16, 3  ;;  %v2852_v34 = vrot.slane %v2272_v0, 3  ;;  %v1349_v26 = vsub.s32 6, %v2825_v22  ;;  %v2854_v16 = vld [vmem:[#allocation8_spill] sm:$0xff]  ;;  %v2868_v32 = vld [vmem:[#allocation14_spill] sm:$0xff] }
  0xd0   : > { %v2853_v14 = vrot.slane %v2276_v40, 3  ;;  %v2855_v63 = vrot.slane %v2854_v16, 3  ;;  %v2856_v0 = vld [vmem:[#allocation20_spill] sm:$0xff]  ;;  %v2861_v17 = vrot.slane %v2860_v38, 3  ;;  %v2625_v7 = vsel %vm1332_vm5, %v1314_v13, %v2475_v45 }
  0xd1   : > { %v1336_v3 = vsel %vm1332_vm5, %v2851_v47, %v2475_v45  ;;  %v2584_v48 = vsel %vm1332_vm5, %v2852_v34, %v2475_v45  ;;  %v2857_v42 = vrot.slane %v2856_v0, 3  ;;  %v2858_v40 = vld [vmem:[#allocation4_spill] sm:$0xff]  ;;  %v1350_v19 = vrot.slane %v2862_v28, %v1349_v26 }
  0xd2   : > { %v2592_v36 = vsel %vm1332_vm5, %v2853_v14, %v2475_v45  ;;  %v2599_v49 = vsel %vm1332_vm5, %v2855_v63, %v2475_v45  ;;  %v2859_v57 = vrot.slane %v2858_v40, 3  ;;  %v2620_v2 = vsel %vm1332_vm5, %v2861_v17, %v2475_v45 }
  0xd3   : > { %v2606_v15 = vsel %vm1332_vm5, %v2857_v42, %v2475_v45  ;;  %v1370_v4 = vrot.slane %v2863_v51, %v1349_v26  ;;  %v1390_v31 = vrot.slane %v2864_v10, %v1349_v26  ;;  %v1410_v53 = vrot.slane %v2865_v24, %v1349_v26 }
  0xd4   : > { %v2613_v29 = vsel %vm1332_vm5, %v2859_v57, %v2475_v45  ;;  %v2632_v11 = vrot.slane %v2866_v54, %v1349_v26  ;;  %v2635_v39 = vrot.slane %v2867_v37, %v1349_v26  ;;  %v1351_v21 = vmul.f32 %v1350_v19, %v2475_v45 }
  0xd5   : > { %v1354_v58 = vmul.f32 %v1350_v19, %v1336_v3  ;;  %v1355_v22 = vmul.f32 %v1350_v19, %v2584_v48  ;;  %v1356_v61 = vmul.f32 %v1350_v19, %v2592_v36  ;;  %v1357_v55 = vmul.f32 %v1350_v19, %v2599_v49 }
  0xd6   : > { %v1358_v44 = vmul.f32 %v1350_v19, %v2606_v15  ;;  %v1371_v20 = vmul.f32 %v1370_v4, %v2475_v45  ;;  %v2644_v43 = vrot.slane %v2868_v32, %v1349_v26  ;;  %v1359_v9 = vadd.f32 %v1351_v21, %v1276_v56 }
  0xd7   : > { %v1360_v33 = vadd.f32 %v1351_v21, %v1277_v35  ;;  %v1361_v12 = vadd.f32 %v1351_v21, %v1278_v30  ;;  %v1373_v6 = vmul.f32 %v1370_v4, %v1336_v3  ;;  %v1362_v46 = vadd.f32 %v1354_v58, %v1279_v41 }
  0xd8   : > { %v1363_v13 = vadd.f32 %v1355_v22, %v1280_v52  ;;  %v1364_v47 = vadd.f32 %v1356_v61, %v1281_v59  ;;  %v1365_v34 = vadd.f32 %v1357_v55, %v1282_v27  ;;  %v1374_v14 = vmul.f32 %v1370_v4, %v2584_v48 }
  0xd9   : > { %v1375_v16 = vmul.f32 %v1370_v4, %v2592_v36  ;;  %v1376_v63 = vmul.f32 %v1370_v4, %v2599_v49  ;;  %v1377_v0 = vmul.f32 %v1370_v4, %v2606_v15  ;;  %v1366_v42 = vadd.f32 %v1358_v44, %v1283_v50 }
  0xda   : > { %v1378_v26 = vmul.f32 %v1370_v4, %v2613_v29  ;;  %v1379_v40 = vadd.f32 %v1371_v20, %v1296_v25  ;;  %v1380_v56 = vadd.f32 %v1371_v20, %v1297_v60  ;;  %v1381_v35 = vadd.f32 %v1373_v6, %v1298_v8 }
  0xdb   : > { %v1382_v30 = vadd.f32 %v1374_v14, %v1299_v18  ;;  %v1383_v57 = vadd.f32 %v1375_v16, %v1300_v5  ;;  %v1384_v41 = vadd.f32 %v1376_v63, %v1301_v1  ;;  %v1385_v52 = vadd.f32 %v1377_v0, %v1302_v23 }
  0xdc   : > { %v1391_v59 = vmul.f32 %v1390_v31, %v2475_v45  ;;  %v1392_v27 = vmul.f32 %v1390_v31, %v1336_v3  ;;  %v1393_v38 = vmul.f32 %v1390_v31, %v2584_v48  ;;  %v1394_v17 = vmul.f32 %v1390_v31, %v2592_v36 }
  0xdd   : > { %v1395_v28 = vmul.f32 %v1390_v31, %v2599_v49  ;;  %v1396_v50 = vmul.f32 %v1390_v31, %v2606_v15  ;;  %v1397_v19 = vmul.f32 %v1390_v31, %v2613_v29  ;;  %v1386_v25 = vadd.f32 %v1378_v26, %v1303_v62 }
  0xde   : > { %v1398_v60 = vmul.f32 %v1390_v31, %v2620_v2  ;;  %v1399_v8 = vadd.f32 %v1391_v59, %v1359_v9  ;;  %v1400_v18 = vadd.f32 %v1392_v27, %v1360_v33  ;;  %v1401_v5 = vadd.f32 %v1393_v38, %v1361_v12 }
  0xdf   : > { %v1402_v1 = vadd.f32 %v1394_v17, %v1362_v46  ;;  %v1403_v23 = vadd.f32 %v1395_v28, %v1363_v13  ;;  %v1404_v51 = vadd.f32 %v1396_v50, %v1364_v47  ;;  %v1405_v4 = vadd.f32 %v1397_v19, %v1365_v34 }
  0xe0   : > { %v1411_v10 = vmul.f32 %v1410_v53, %v1336_v3  ;;  %v1412_v24 = vmul.f32 %v1410_v53, %v2584_v48  ;;  %v1413_v54 = vmul.f32 %v1410_v53, %v2592_v36  ;;  %v1414_v37 = vmul.f32 %v1410_v53, %v2599_v49 }
  0xe1   : > { %v1415_v21 = vmul.f32 %v1410_v53, %v2606_v15  ;;  %v1416_v62 = vmul.f32 %v1410_v53, %v2613_v29  ;;  %v1417_v31 = vmul.f32 %v1410_v53, %v2620_v2  ;;  %v1406_v58 = vadd.f32 %v1398_v60, %v1366_v42 }
  0xe2   : > { %v1418_v22 = vmul.f32 %v1410_v53, %v2625_v7  ;;  %v1419_v61 = vadd.f32 %v1411_v10, %v1379_v40  ;;  %v1420_v55 = vadd.f32 %v1412_v24, %v1380_v56  ;;  %v1421_v44 = vadd.f32 %v1413_v54, %v1381_v35 }
  0xe3   : > { %v1422_v20 = vadd.f32 %v1414_v37, %v1382_v30  ;;  %v1423_v3 = vadd.f32 %v1415_v21, %v1383_v57  ;;  %v1424_v32 = vadd.f32 %v1416_v62, %v1384_v41  ;;  %v1425_v9 = vadd.f32 %v1417_v31, %v1385_v52 }
  0xe4   : > { %v1431_v33 = vmul.f32 %v2632_v11, %v2584_v48  ;;  %v1432_v12 = vmul.f32 %v2632_v11, %v2592_v36  ;;  %v1433_v6 = vmul.f32 %v2632_v11, %v2599_v49  ;;  %v1434_v46 = vmul.f32 %v2632_v11, %v2606_v15 }
  0xe5   : > { %v1435_v53 = vmul.f32 %v2632_v11, %v2613_v29  ;;  %v1436_v13 = vmul.f32 %v2632_v11, %v2620_v2  ;;  %v1437_v47 = vmul.f32 %v2632_v11, %v2625_v7  ;;  %v1426_v34 = vadd.f32 %v1418_v22, %v1386_v25 }
  0xe6   : > { %v1438_v48 = vmul.f32 %v2632_v11, %v2475_v45  ;;  %v1439_v14 = vadd.f32 %v1431_v33, %v1399_v8  ;;  %v1440_v16 = vadd.f32 %v1432_v12, %v1400_v18  ;;  %v1441_v63 = vadd.f32 %v1433_v6, %v1401_v5 }
  0xe7   : > { %v1442_v0 = vadd.f32 %v1434_v46, %v1402_v1  ;;  %v1443_v42 = vadd.f32 %v1435_v53, %v1403_v23  ;;  %v1444_v26 = vadd.f32 %v1436_v13, %v1404_v51  ;;  %v1445_v40 = vadd.f32 %v1437_v47, %v1405_v4 }
  0xe8   : > { %v1451_v56 = vmul.f32 %v2635_v39, %v2592_v36  ;;  %v1452_v35 = vmul.f32 %v2635_v39, %v2599_v49  ;;  %v1453_v30 = vmul.f32 %v2635_v39, %v2606_v15  ;;  %v1454_v57 = vmul.f32 %v2635_v39, %v2613_v29 }
  0xe9   : > { %v1455_v11 = vmul.f32 %v2635_v39, %v2620_v2  ;;  %v1456_v41 = vmul.f32 %v2635_v39, %v2625_v7  ;;  %v1457_v52 = vmul.f32 %v2635_v39, %v2475_v45  ;;  %v1446_v59 = vadd.f32 %v1438_v48, %v1406_v58 }
  0xea   : > { %v1459_v36 = vadd.f32 %v1451_v56, %v1419_v61  ;;  %v1460_v27 = vadd.f32 %v1452_v35, %v1420_v55  ;;  %v1471_v38 = vmul.f32 %v2644_v43, %v2599_v49  ;;  %v1461_v17 = vadd.f32 %v1453_v30, %v1421_v44 }
  0xeb   : > { %v1462_v28 = vadd.f32 %v1454_v57, %v1422_v20  ;;  %v1463_v50 = vadd.f32 %v1455_v11, %v1423_v3  ;;  %v1464_v19 = vadd.f32 %v1456_v41, %v1424_v32  ;;  %v1465_v25 = vadd.f32 %v1457_v52, %v1425_v9 }
  0xec   : > { %v1472_v60 = vmul.f32 %v2644_v43, %v2606_v15  ;;  %v1473_v8 = vmul.f32 %v2644_v43, %v2613_v29  ;;  %v1474_v39 = vmul.f32 %v2644_v43, %v2620_v2  ;;  %v1466_v18 = vadd.f32 %v1457_v52, %v1426_v34  ;;  %v1579_v15 = vld [vmem:[%s2723_s2] ss:$0 sm:$0xff] }
  0xed   : > { %v1475_v5 = vmul.f32 %v2644_v43, %v2625_v7  ;;  %v1476_v49 = vmul.f32 %v2644_v43, %v2475_v45  ;;  %v1479_v1 = vadd.f32 %v1471_v38, %v1439_v14 }
  0xee   : > { %v1480_v23 = vadd.f32 %v1472_v60, %v1440_v16  ;;  %v1481_v51 = vadd.f32 %v1473_v8, %v1441_v63  ;;  %v1482_v4 = vadd.f32 %v1474_v39, %v1442_v0 }
  0xef   : > { %v1483_v10 = vadd.f32 %v1475_v5, %v1443_v42  ;;  %v1484_v29 = vadd.f32 %v1476_v49, %v1444_v26  ;;  %v1485_v24 = vadd.f32 %v1476_v49, %v1445_v40  ;;  %v1486_v54 = vadd.f32 %v1476_v49, %v1446_v59 }
  0xf0   : > { %v1487_v2 = vadd.f32 %v1479_v1, %v1459_v36  ;;  %v1488_v37 = vadd.f32 %v1480_v23, %v1460_v27  ;;  %v1489_v7 = vadd.f32 %v1481_v51, %v1461_v17  ;;  %v1490_v21 = vadd.f32 %v1482_v4, %v1462_v28 }
  0xf1   : > { %v1491_v45 = vadd.f32 %v1483_v10, %v1463_v50  ;;  %v1492_v43 = vadd.f32 %v1484_v29, %v1464_v19  ;;  %v1493_v62 = vadd.f32 %v1485_v24, %v1465_v25  ;;  %v1494_v31 = vadd.f32 %v1486_v54, %v1466_v18 }
  0xf2   : > { %v1501_v58 = vadd.f32 %v1579_v15, %v1487_v2  ;;  %v1502_v22 = vadd.f32 %v1579_v15, %v1488_v37  ;;  %v1503_v61 = vadd.f32 %v1579_v15, %v1489_v7  ;;  %v1504_v55 = vadd.f32 %v1579_v15, %v1490_v21 }
  0xf3   : > { %v1505_v44 = vadd.f32 %v1579_v15, %v1491_v45  ;;  %v1506_v20 = vadd.f32 %v1579_v15, %v1492_v43  ;;  %v1507_v3 = vadd.f32 %v1579_v15, %v1493_v62  ;;  %v1508_v32 = vadd.f32 %v1579_v15, %v1494_v31 }
  0xf4   : > { %1509 = vst [vmem:[%s1659_s22 + $0x1] sm:$0xff] %v1501_v58  ;;  %1510 = vst [vmem:[%s1659_s22 + $0x9] sm:$0xff] %v1502_v22 }
  0xf5   : > { %1511 = vst [vmem:[%s1659_s22 + $0x11] sm:$0xff] %v1503_v61  ;;  %1512 = vst [vmem:[%s1659_s22 + $0x19] sm:$0xff] %v1504_v55 }
  0xf6   : > { %1513 = vst [vmem:[%s1659_s22 + $0x21] sm:$0xff] %v1505_v44  ;;  %1514 = vst [vmem:[%s1659_s22 + $0x29] sm:$0xff] %v1506_v20 }
  0xf7   : > { %1515 = vst [vmem:[%s1659_s22 + $0x31] sm:$0xff] %v1507_v3  ;;  %1516 = vst [vmem:[%s1659_s22 + $0x39] sm:$0xff] %v1508_v32 }
  0xf8 PF: > { %s13_s12 = sadd.s32 1, %s1613_s12  }
  0xf9   : > { %p10_p4 = scmp.ge.s32.totalorder %s13_s12, 4  }
  0xfb   :  { %12 = sbr.rel (!%p10_p4) target bundleno = 1 (0x1), region = 64 }

</bundles_post_ra>
